<compile_context>
chip_gen: v7x
topology: tpu7x:2x2x1
jax: 0.10.0
libtpu: 0.0.40
codegen_flags: <defaults>
</compile_context>

<pallas_src>
import jax
import jax.numpy as jnp
import numpy as np
from jax import lax
from jax.experimental import pallas as pl
from jax.experimental.pallas import tpu as pltpu

HIDDEN = 100       # nn.LSTM(hidden_size=100)
HIDDEN_PAD = 128   # one full 128-lane vreg per gate

_VMEM_TILE_BUDGET = 30 * 1024 * 1024   # per-grid-step working set target (v7x-safe)
_VMEM_LIMIT_BYTES = 48 * 1024 * 1024


def _round_up(x, m):
    return ((x + m - 1) // m) * m


def _pick_batch_tile(B, T, D, mxu_bytes):
    """Largest batch tile (multiple of 8 sublanes, <=128) whose per-grid-step
    working set (double-buffered tiles + pre-gate scratch + transients) stays
    under the VMEM budget."""
    HP = HIDDEN_PAD
    weights = 2 * ((D + HP) * 4 * HP * mxu_bytes + (4 * HP + HP + 1) * 4)
    per_row = (2 * D * 4        # x tile (double-buffered)
               + 2 * HP * 4     # rec tile (double-buffered)
               + 2 * 4          # out tile (double-buffered)
               + 4 * HP * 4     # pre-gate VMEM scratch
               + 6 * HP * 4)    # transient vector values (pre-gates / head)
    tb = 128
    while tb > 8 and weights + T * tb * per_row > _VMEM_TILE_BUDGET:
        tb //= 2
    return min(tb, _round_up(B, 8))


def _lstm_disc_kernel(x_ref, wih_ref, whh_ref, b_ref, wlin_ref, blin_ref,
                      rec_ref, out_ref, pre_ref):
    # x_ref:    (T, TB, D)      input tile, time-major
    # wih_ref:  (D, 4*HP)       input->gate weights (gate-padded, MXU dtype)
    # whh_ref:  (HP, 4*HP)      hidden->gate weights (gate-padded, MXU dtype)
    # b_ref:    (1, 4*HP)       bias_ih + bias_hh (gate-padded, f32)
    # wlin_ref: (1, HP)         Linear(100,1) weight (padded, f32)
    # blin_ref: (1, 1)          Linear bias
    # rec_ref:  (T, TB, HP)     output: per-step hidden state
    # out_ref:  (TB, T)         output: sigmoid(linear(h_t)), lane-dense in T
    # pre_ref:  (T, TB, 4*HP)   VMEM scratch: hoisted input projection
    T, TB, D = x_ref.shape
    HP = whh_ref.shape[0]
    mxu_dtype = whh_ref.dtype

    # ---- Hoisted input projection: one large MXU matmul over all timesteps ----
    x_all = x_ref[...].reshape(T * TB, D).astype(mxu_dtype)
    pre = jnp.dot(x_all, wih_ref[...], preferred_element_type=jnp.float32)
    pre_ref[...] = (pre + b_ref[...]).reshape(T, TB, 4 * HP)

    whh = whh_ref[...]

    # ---- Serial recurrence: only h @ W_hh + gate math per step ----
    def step(t, carry):
        h, c = carry
        gates = pre_ref[t] + jnp.dot(h.astype(mxu_dtype), whh,
                                     preferred_element_type=jnp.float32)
        # PyTorch gate order [i, f, g, o]; each gate is one aligned 128-lane slab.
        i_g = jax.nn.sigmoid(gates[:, 0 * HP:1 * HP])
        f_g = jax.nn.sigmoid(gates[:, 1 * HP:2 * HP])
        g_g = jnp.tanh(gates[:, 2 * HP:3 * HP])
        o_g = jax.nn.sigmoid(gates[:, 3 * HP:4 * HP])
        c_new = f_g * c + i_g * g_g
        h_new = o_g * jnp.tanh(c_new)
        rec_ref[t] = h_new
        return h_new, c_new

    h0 = jnp.zeros((TB, HP), jnp.float32)
    c0 = jnp.zeros((TB, HP), jnp.float32)
    if T <= 16:
        unroll = T
    elif T % 8 == 0:
        unroll = 8
    elif T % 4 == 0:
        unroll = 4
    elif T % 2 == 0:
        unroll = 2
    else:
        unroll = 1
    lax.fori_loop(0, T, step, (h0, c0), unroll=unroll)

    # ---- Hoisted Linear(100,1)+Sigmoid head: once for the whole tile ----
    rec_all = rec_ref[...]                                             # (T, TB, HP)
    logits = jnp.sum(rec_all * wlin_ref[...].reshape(1, 1, HP), axis=-1)  # (T, TB)
    out_ref[...] = jnp.transpose(jax.nn.sigmoid(logits + blin_ref[...]))


def lstm_discriminator_forward(x, kernel_params):
    """x: (batch, seq, in_dim) f32 -> (outputs (B,T,1), recurrent_features (B,T,100))."""
    wih_p, whh_p, b_p, wlin_p, blin_p = kernel_params
    B, T, D = x.shape
    H, HP = HIDDEN, HIDDEN_PAD

    mxu_bytes = jnp.dtype(whh_p.dtype).itemsize
    tb = _pick_batch_tile(B, T, D, mxu_bytes)
    b_pad = _round_up(B, tb)
    nb = b_pad // tb

    x_t = jnp.transpose(x.astype(jnp.float32), (1, 0, 2))   # (T, B, D) time-major
    if b_pad != B:
        x_t = jnp.pad(x_t, ((0, 0), (0, b_pad - B), (0, 0)))

    rec_p, out_p = pl.pallas_call(
        _lstm_disc_kernel,
        out_shape=(
            jax.ShapeDtypeStruct((T, b_pad, HP), jnp.float32),
            jax.ShapeDtypeStruct((b_pad, T), jnp.float32),
        ),
        grid_spec=pltpu.PrefetchScalarGridSpec(
            num_scalar_prefetch=0,
            grid=(nb,),
            in_specs=[
                pl.BlockSpec((T, tb, D), lambda b: (0, b, 0)),       # x tile
                pl.BlockSpec((D, 4 * HP), lambda b: (0, 0)),         # W_ih
                pl.BlockSpec((HP, 4 * HP), lambda b: (0, 0)),        # W_hh
                pl.BlockSpec((1, 4 * HP), lambda b: (0, 0)),         # bias
                pl.BlockSpec((1, HP), lambda b: (0, 0)),             # linear W
                pl.BlockSpec((1, 1), lambda b: (0, 0)),              # linear b
            ],
            out_specs=(
                pl.BlockSpec((T, tb, HP), lambda b: (0, b, 0)),      # rec features
                pl.BlockSpec((tb, T), lambda b: (b, 0)),             # head output
            ),
            scratch_shapes=[pltpu.VMEM((T, tb, 4 * HP), jnp.float32)],
        ),
        compiler_params=pltpu.CompilerParams(
            dimension_semantics=("parallel",),
            vmem_limit_bytes=_VMEM_LIMIT_BYTES,
        ),
    )(x_t, wih_p, whh_p, b_p, wlin_p, blin_p)

    recurrent_features = jnp.transpose(rec_p[:, :B, :H], (1, 0, 2))  # (B, T, H)
    outputs = out_p[:B, :, None]                                     # (B, T, 1)
    return outputs, recurrent_features


def make_params(key, in_dim):
    """Raw PyTorch-layout params, default init U(-1/sqrt(H), 1/sqrt(H))."""
    H = HIDDEN
    k = 1.0 / np.sqrt(H)
    ks = jax.random.split(key, 6)
    w_ih = jax.random.uniform(ks[0], (4 * H, in_dim), jnp.float32, -k, k)
    w_hh = jax.random.uniform(ks[1], (4 * H, H), jnp.float32, -k, k)
    b_ih = jax.random.uniform(ks[2], (4 * H,), jnp.float32, -k, k)
    b_hh = jax.random.uniform(ks[3], (4 * H,), jnp.float32, -k, k)
    w_lin = jax.random.uniform(ks[4], (1, H), jnp.float32, -k, k)
    b_lin = jax.random.uniform(ks[5], (1,), jnp.float32, -k, k)
    return w_ih, w_hh, b_ih, b_hh, w_lin, b_lin


def prepare_params(raw_params, mxu_dtype=jnp.float32):
    """Pad/transpose PyTorch-layout params into the kernel layout.

    Each gate gets its own 128-lane slab (columns [g*128, g*128+100)); the extra
    28 lanes are zero, which keeps the padded hidden lanes exactly zero through
    the whole recurrence (sigmoid(0)*0 terms vanish with c0 = 0)."""
    w_ih, w_hh, b_ih, b_hh, w_lin, b_lin = raw_params
    H, HP = HIDDEN, HIDDEN_PAD
    D = w_ih.shape[1]
    b_sum = b_ih + b_hh

    wih_p = jnp.zeros((D, 4 * HP), jnp.float32)
    whh_p = jnp.zeros((HP, 4 * HP), jnp.float32)
    b_p = jnp.zeros((1, 4 * HP), jnp.float32)
    for g in range(4):
        wih_p = wih_p.at[:, g * HP:g * HP + H].set(w_ih[g * H:(g + 1) * H, :].T)
        whh_p = whh_p.at[:H, g * HP:g * HP + H].set(w_hh[g * H:(g + 1) * H, :].T)
        b_p = b_p.at[:, g * HP:g * HP + H].set(b_sum[None, g * H:(g + 1) * H])
    wlin_p = jnp.zeros((1, HP), jnp.float32).at[:, :H].set(w_lin)
    blin_p = b_lin.reshape(1, 1).astype(jnp.float32)
    return (wih_p.astype(mxu_dtype), whh_p.astype(mxu_dtype), b_p, wlin_p, blin_p)


def reference_forward(x, raw_params):
    """Pure-JAX reference with exact PyTorch LSTMDiscriminator semantics."""
    w_ih, w_hh, b_ih, b_hh, w_lin, b_lin = raw_params
    B, T, D = x.shape
    H = HIDDEN
    wih, whh, b = w_ih.T, w_hh.T, (b_ih + b_hh)[None, :]

    def step(carry, x_t):
        h, c = carry
        gates = x_t @ wih + h @ whh + b
        i_g = jax.nn.sigmoid(gates[:, :H])
        f_g = jax.nn.sigmoid(gates[:, H:2 * H])
        g_g = jnp.tanh(gates[:, 2 * H:3 * H])
        o_g = jax.nn.sigmoid(gates[:, 3 * H:])
        c = f_g * c + i_g * g_g
        h = o_g * jnp.tanh(c)
        return (h, c), h

    (_, _), hs = lax.scan(step,
                          (jnp.zeros((B, H), jnp.float32),
                           jnp.zeros((B, H), jnp.float32)),
                          jnp.transpose(x, (1, 0, 2)))
    rec = jnp.transpose(hs, (1, 0, 2))
    out = jax.nn.sigmoid(rec.reshape(B * T, H) @ w_lin.T + b_lin)
    return out.reshape(B, T, 1), rec


if __name__ == "__main__":
    key = jax.random.PRNGKey(0)
    k_param, k_x = jax.random.split(key)

    batch, seq, in_dim = 2, 8, 4
    x = jax.random.normal(k_x, (batch, seq, in_dim), jnp.float32)
    raw = make_params(k_param, in_dim)
    ref_out, ref_rec = reference_forward(x, raw)

    # f32 weights: exact match against the pure-JAX reference.
    out_f32, rec_f32 = jax.block_until_ready(
        lstm_discriminator_forward(x, prepare_params(raw, jnp.float32)))
    assert out_f32.shape == (batch, seq, 1)
    assert rec_f32.shape == (batch, seq, HIDDEN)
    np.testing.assert_allclose(np.asarray(out_f32), np.asarray(ref_out),
                               rtol=1e-5, atol=1e-5)
    np.testing.assert_allclose(np.asarray(rec_f32), np.asarray(ref_rec),
                               rtol=1e-5, atol=1e-5)

    # bf16 MXU weights (v6e/v7x fast path): f32 accumulation + f32 h/c carry.
    out_bf16, rec_bf16 = jax.block_until_ready(
        lstm_discriminator_forward(x, prepare_params(raw, jnp.bfloat16)))
    np.testing.assert_allclose(np.asarray(out_bf16), np.asarray(ref_out),
                               rtol=2e-2, atol=2e-2)
    np.testing.assert_allclose(np.asarray(rec_bf16), np.asarray(ref_rec),
                               rtol=2e-2, atol=2e-2)

    print("KERNEL_OK")
</pallas_src>

<mosaic_0001>
module attributes {stable_mosaic.version = 11 : i64} {
  func.func @_lstm_disc_kernel(%arg0: i32, %arg1: memref<8x8x4xf32, #tpu.memory_space<vmem>>, %arg2: memref<4x512xf32, #tpu.memory_space<vmem>>, %arg3: memref<128x512xf32, #tpu.memory_space<vmem>>, %arg4: memref<1x512xf32, #tpu.memory_space<vmem>>, %arg5: memref<1x128xf32, #tpu.memory_space<vmem>>, %arg6: memref<1x1xf32, #tpu.memory_space<vmem>>, %arg7: memref<8x8x128xf32, #tpu.memory_space<vmem>>, %arg8: memref<8x8xf32, #tpu.memory_space<vmem>>, %arg9: memref<8x8x512xf32, #tpu.memory_space<vmem>>) attributes {dimension_semantics = [#tpu.dimension_semantics<parallel>], iteration_bounds = array<i64: 1>, scalar_prefetch = 0 : i64, scratch_operands = 1 : i64, tpu.core_type = #tpu.core_type<tc>, window_params = [{transform_indices = @transform_0, window_bounds = array<i64: 8, 8, 4>}, {pipeline_mode = #tpu.pipeline_mode<synchronous>, transform_indices = @transform_1, window_bounds = array<i64: 4, 512>}, {pipeline_mode = #tpu.pipeline_mode<synchronous>, transform_indices = @transform_2, window_bounds = array<i64: 128, 512>}, {pipeline_mode = #tpu.pipeline_mode<synchronous>, transform_indices = @transform_3, window_bounds = array<i64: 1, 512>}, {pipeline_mode = #tpu.pipeline_mode<synchronous>, transform_indices = @transform_4, window_bounds = array<i64: 1, 128>}, {pipeline_mode = #tpu.pipeline_mode<synchronous>, transform_indices = @transform_5, window_bounds = array<i64: 1, 1>}, {transform_indices = @transform_6, window_bounds = array<i64: 8, 8, 128>}, {transform_indices = @transform_7, window_bounds = array<i64: 8, 8>}]} {
    %c0 = arith.constant 0 : index
    %c0_0 = arith.constant 0 : index
    %c0_1 = arith.constant 0 : index
    %0 = vector.load %arg1[%c0, %c0_0, %c0_1] : memref<8x8x4xf32, #tpu.memory_space<vmem>>, vector<8x8x4xf32>
    %1 = vector.shape_cast %0 : vector<8x8x4xf32> to vector<64x4xf32>
    %c0_2 = arith.constant 0 : index
    %c0_3 = arith.constant 0 : index
    %2 = vector.load %arg2[%c0_2, %c0_3] : memref<4x512xf32, #tpu.memory_space<vmem>>, vector<4x512xf32>
    %cst = arith.constant dense<0.000000e+00> : vector<64x512xf32>
    %3 = tpu.matmul %1, %2, %cst {dimension_numbers = #tpu.dot_dimension_numbers<[1], [0], [0], [1], [0, 0, 1, 1], [], []>} : vector<64x4xf32>, vector<4x512xf32>, vector<64x512xf32> -> vector<64x512xf32>
    %c0_4 = arith.constant 0 : index
    %c0_5 = arith.constant 0 : index
    %4 = vector.load %arg4[%c0_4, %c0_5] : memref<1x512xf32, #tpu.memory_space<vmem>>, vector<1x512xf32>
    %5 = vector.broadcast %4 : vector<1x512xf32> to vector<64x512xf32>
    %6 = arith.addf %3, %5 : vector<64x512xf32>
    %7 = vector.shape_cast %6 : vector<64x512xf32> to vector<8x8x512xf32>
    %c0_6 = arith.constant 0 : index
    %c0_7 = arith.constant 0 : index
    %c0_8 = arith.constant 0 : index
    %8 = vector.load %arg9[%c0_6, %c0_7, %c0_8] : memref<8x8x512xf32, #tpu.memory_space<vmem>>, vector<8x8x512xf32>
    tpu.vector_store %arg9[%c0_6, %c0_7, %c0_8], %7 {strides = array<i32>} : memref<8x8x512xf32, #tpu.memory_space<vmem>>, vector<8x8x512xf32>,
    %c0_9 = arith.constant 0 : index
    %c0_10 = arith.constant 0 : index
    %9 = vector.load %arg3[%c0_9, %c0_10] : memref<128x512xf32, #tpu.memory_space<vmem>>, vector<128x512xf32>
    %cst_11 = arith.constant 0.000000e+00 : f32
    %10 = vector.broadcast %cst_11 : f32 to vector<8x128xf32>
    %cst_12 = arith.constant 0.000000e+00 : f32
    %11 = vector.broadcast %cst_12 : f32 to vector<8x128xf32>
    %c0_i32 = arith.constant 0 : i32
    %12 = arith.index_cast %c0_i32 : i32 to index
    %c0_13 = arith.constant 0 : index
    %c0_14 = arith.constant 0 : index
    %13 = vector.load %arg9[%12, %c0_13, %c0_14] : memref<8x8x512xf32, #tpu.memory_space<vmem>>, vector<1x8x512xf32>
    %14 = vector.shape_cast %13 : vector<1x8x512xf32> to vector<8x512xf32>
    %cst_15 = arith.constant dense<0.000000e+00> : vector<8x512xf32>
    %15 = tpu.matmul %10, %9, %cst_15 {dimension_numbers = #tpu.dot_dimension_numbers<[1], [0], [0], [1], [0, 0, 1, 1], [], []>} : vector<8x128xf32>, vector<128x512xf32>, vector<8x512xf32> -> vector<8x512xf32>
    %16 = arith.addf %14, %15 : vector<8x512xf32>
    %17 = vector.extract_strided_slice %16 {offsets = [0, 0], sizes = [8, 128], strides = [1, 1]} : vector<8x512xf32> to vector<8x128xf32>
    %18 = arith.negf %17 : vector<8x128xf32>
    %19 = math.exp %18 : vector<8x128xf32>
    %cst_16 = arith.constant 1.000000e+00 : f32
    %20 = vector.broadcast %cst_16 : f32 to vector<8x128xf32>
    %21 = arith.addf %20, %19 : vector<8x128xf32>
    %22 = arith.divf %20, %21 : vector<8x128xf32>
    %23 = vector.extract_strided_slice %16 {offsets = [0, 128], sizes = [8, 128], strides = [1, 1]} : vector<8x512xf32> to vector<8x128xf32>
    %24 = arith.negf %23 : vector<8x128xf32>
    %25 = math.exp %24 : vector<8x128xf32>
    %cst_17 = arith.constant 1.000000e+00 : f32
    %26 = vector.broadcast %cst_17 : f32 to vector<8x128xf32>
    %27 = arith.addf %26, %25 : vector<8x128xf32>
    %28 = arith.divf %26, %27 : vector<8x128xf32>
    %29 = vector.extract_strided_slice %16 {offsets = [0, 256], sizes = [8, 128], strides = [1, 1]} : vector<8x512xf32> to vector<8x128xf32>
    %30 = math.tanh %29 : vector<8x128xf32>
    %31 = vector.extract_strided_slice %16 {offsets = [0, 384], sizes = [8, 128], strides = [1, 1]} : vector<8x512xf32> to vector<8x128xf32>
    %32 = arith.negf %31 : vector<8x128xf32>
    %33 = math.exp %32 : vector<8x128xf32>
    %cst_18 = arith.constant 1.000000e+00 : f32
    %34 = vector.broadcast %cst_18 : f32 to vector<8x128xf32>
    %35 = arith.addf %34, %33 : vector<8x128xf32>
    %36 = arith.divf %34, %35 : vector<8x128xf32>
    %37 = arith.mulf %28, %11 : vector<8x128xf32>
    %38 = arith.mulf %22, %30 : vector<8x128xf32>
    %39 = arith.addf %37, %38 : vector<8x128xf32>
    %40 = math.tanh %39 : vector<8x128xf32>
    %41 = arith.mulf %36, %40 : vector<8x128xf32>
    %42 = arith.index_cast %c0_i32 : i32 to index
    %c0_19 = arith.constant 0 : index
    %c0_20 = arith.constant 0 : index
    %43 = vector.load %arg7[%42, %c0_19, %c0_20] : memref<8x8x128xf32, #tpu.memory_space<vmem>>, vector<1x8x128xf32>
    %44 = vector.shape_cast %43 : vector<1x8x128xf32> to vector<8x128xf32>
    %45 = vector.shape_cast %41 : vector<8x128xf32> to vector<1x8x128xf32>
    tpu.vector_store %arg7[%42, %c0_19, %c0_20], %45 {strides = array<i32>} : memref<8x8x128xf32, #tpu.memory_space<vmem>>, vector<1x8x128xf32>,
    %c1_i32 = arith.constant 1 : i32
    %46 = arith.index_cast %c1_i32 : i32 to index
    %c0_21 = arith.constant 0 : index
    %c0_22 = arith.constant 0 : index
    %47 = vector.load %arg9[%46, %c0_21, %c0_22] : memref<8x8x512xf32, #tpu.memory_space<vmem>>, vector<1x8x512xf32>
    %48 = vector.shape_cast %47 : vector<1x8x512xf32> to vector<8x512xf32>
    %cst_23 = arith.constant dense<0.000000e+00> : vector<8x512xf32>
    %49 = tpu.matmul %41, %9, %cst_23 {dimension_numbers = #tpu.dot_dimension_numbers<[1], [0], [0], [1], [0, 0, 1, 1], [], []>} : vector<8x128xf32>, vector<128x512xf32>, vector<8x512xf32> -> vector<8x512xf32>
    %50 = arith.addf %48, %49 : vector<8x512xf32>
    %51 = vector.extract_strided_slice %50 {offsets = [0, 0], sizes = [8, 128], strides = [1, 1]} : vector<8x512xf32> to vector<8x128xf32>
    %52 = arith.negf %51 : vector<8x128xf32>
    %53 = math.exp %52 : vector<8x128xf32>
    %cst_24 = arith.constant 1.000000e+00 : f32
    %54 = vector.broadcast %cst_24 : f32 to vector<8x128xf32>
    %55 = arith.addf %54, %53 : vector<8x128xf32>
    %56 = arith.divf %54, %55 : vector<8x128xf32>
    %57 = vector.extract_strided_slice %50 {offsets = [0, 128], sizes = [8, 128], strides = [1, 1]} : vector<8x512xf32> to vector<8x128xf32>
    %58 = arith.negf %57 : vector<8x128xf32>
    %59 = math.exp %58 : vector<8x128xf32>
    %cst_25 = arith.constant 1.000000e+00 : f32
    %60 = vector.broadcast %cst_25 : f32 to vector<8x128xf32>
    %61 = arith.addf %60, %59 : vector<8x128xf32>
    %62 = arith.divf %60, %61 : vector<8x128xf32>
    %63 = vector.extract_strided_slice %50 {offsets = [0, 256], sizes = [8, 128], strides = [1, 1]} : vector<8x512xf32> to vector<8x128xf32>
    %64 = math.tanh %63 : vector<8x128xf32>
    %65 = vector.extract_strided_slice %50 {offsets = [0, 384], sizes = [8, 128], strides = [1, 1]} : vector<8x512xf32> to vector<8x128xf32>
    %66 = arith.negf %65 : vector<8x128xf32>
    %67 = math.exp %66 : vector<8x128xf32>
    %cst_26 = arith.constant 1.000000e+00 : f32
    %68 = vector.broadcast %cst_26 : f32 to vector<8x128xf32>
    %69 = arith.addf %68, %67 : vector<8x128xf32>
    %70 = arith.divf %68, %69 : vector<8x128xf32>
    %71 = arith.mulf %62, %39 : vector<8x128xf32>
    %72 = arith.mulf %56, %64 : vector<8x128xf32>
    %73 = arith.addf %71, %72 : vector<8x128xf32>
    %74 = math.tanh %73 : vector<8x128xf32>
    %75 = arith.mulf %70, %74 : vector<8x128xf32>
    %76 = arith.index_cast %c1_i32 : i32 to index
    %c0_27 = arith.constant 0 : index
    %c0_28 = arith.constant 0 : index
    %77 = vector.load %arg7[%76, %c0_27, %c0_28] : memref<8x8x128xf32, #tpu.memory_space<vmem>>, vector<1x8x128xf32>
    %78 = vector.shape_cast %77 : vector<1x8x128xf32> to vector<8x128xf32>
    %79 = vector.shape_cast %75 : vector<8x128xf32> to vector<1x8x128xf32>
    tpu.vector_store %arg7[%76, %c0_27, %c0_28], %79 {strides = array<i32>} : memref<8x8x128xf32, #tpu.memory_space<vmem>>, vector<1x8x128xf32>,
    %c2_i32 = arith.constant 2 : i32
    %80 = arith.index_cast %c2_i32 : i32 to index
    %c0_29 = arith.constant 0 : index
    %c0_30 = arith.constant 0 : index
    %81 = vector.load %arg9[%80, %c0_29, %c0_30] : memref<8x8x512xf32, #tpu.memory_space<vmem>>, vector<1x8x512xf32>
    %82 = vector.shape_cast %81 : vector<1x8x512xf32> to vector<8x512xf32>
    %cst_31 = arith.constant dense<0.000000e+00> : vector<8x512xf32>
    %83 = tpu.matmul %75, %9, %cst_31 {dimension_numbers = #tpu.dot_dimension_numbers<[1], [0], [0], [1], [0, 0, 1, 1], [], []>} : vector<8x128xf32>, vector<128x512xf32>, vector<8x512xf32> -> vector<8x512xf32>
    %84 = arith.addf %82, %83 : vector<8x512xf32>
    %85 = vector.extract_strided_slice %84 {offsets = [0, 0], sizes = [8, 128], strides = [1, 1]} : vector<8x512xf32> to vector<8x128xf32>
    %86 = arith.negf %85 : vector<8x128xf32>
    %87 = math.exp %86 : vector<8x128xf32>
    %cst_32 = arith.constant 1.000000e+00 : f32
    %88 = vector.broadcast %cst_32 : f32 to vector<8x128xf32>
    %89 = arith.addf %88, %87 : vector<8x128xf32>
    %90 = arith.divf %88, %89 : vector<8x128xf32>
    %91 = vector.extract_strided_slice %84 {offsets = [0, 128], sizes = [8, 128], strides = [1, 1]} : vector<8x512xf32> to vector<8x128xf32>
    %92 = arith.negf %91 : vector<8x128xf32>
    %93 = math.exp %92 : vector<8x128xf32>
    %cst_33 = arith.constant 1.000000e+00 : f32
    %94 = vector.broadcast %cst_33 : f32 to vector<8x128xf32>
    %95 = arith.addf %94, %93 : vector<8x128xf32>
    %96 = arith.divf %94, %95 : vector<8x128xf32>
    %97 = vector.extract_strided_slice %84 {offsets = [0, 256], sizes = [8, 128], strides = [1, 1]} : vector<8x512xf32> to vector<8x128xf32>
    %98 = math.tanh %97 : vector<8x128xf32>
    %99 = vector.extract_strided_slice %84 {offsets = [0, 384], sizes = [8, 128], strides = [1, 1]} : vector<8x512xf32> to vector<8x128xf32>
    %100 = arith.negf %99 : vector<8x128xf32>
    %101 = math.exp %100 : vector<8x128xf32>
    %cst_34 = arith.constant 1.000000e+00 : f32
    %102 = vector.broadcast %cst_34 : f32 to vector<8x128xf32>
    %103 = arith.addf %102, %101 : vector<8x128xf32>
    %104 = arith.divf %102, %103 : vector<8x128xf32>
    %105 = arith.mulf %96, %73 : vector<8x128xf32>
    %106 = arith.mulf %90, %98 : vector<8x128xf32>
    %107 = arith.addf %105, %106 : vector<8x128xf32>
    %108 = math.tanh %107 : vector<8x128xf32>
    %109 = arith.mulf %104, %108 : vector<8x128xf32>
    %110 = arith.index_cast %c2_i32 : i32 to index
    %c0_35 = arith.constant 0 : index
    %c0_36 = arith.constant 0 : index
    %111 = vector.load %arg7[%110, %c0_35, %c0_36] : memref<8x8x128xf32, #tpu.memory_space<vmem>>, vector<1x8x128xf32>
    %112 = vector.shape_cast %111 : vector<1x8x128xf32> to vector<8x128xf32>
    %113 = vector.shape_cast %109 : vector<8x128xf32> to vector<1x8x128xf32>
    tpu.vector_store %arg7[%110, %c0_35, %c0_36], %113 {strides = array<i32>} : memref<8x8x128xf32, #tpu.memory_space<vmem>>, vector<1x8x128xf32>,
    %c3_i32 = arith.constant 3 : i32
    %114 = arith.index_cast %c3_i32 : i32 to index
    %c0_37 = arith.constant 0 : index
    %c0_38 = arith.constant 0 : index
    %115 = vector.load %arg9[%114, %c0_37, %c0_38] : memref<8x8x512xf32, #tpu.memory_space<vmem>>, vector<1x8x512xf32>
    %116 = vector.shape_cast %115 : vector<1x8x512xf32> to vector<8x512xf32>
    %cst_39 = arith.constant dense<0.000000e+00> : vector<8x512xf32>
    %117 = tpu.matmul %109, %9, %cst_39 {dimension_numbers = #tpu.dot_dimension_numbers<[1], [0], [0], [1], [0, 0, 1, 1], [], []>} : vector<8x128xf32>, vector<128x512xf32>, vector<8x512xf32> -> vector<8x512xf32>
    %118 = arith.addf %116, %117 : vector<8x512xf32>
    %119 = vector.extract_strided_slice %118 {offsets = [0, 0], sizes = [8, 128], strides = [1, 1]} : vector<8x512xf32> to vector<8x128xf32>
    %120 = arith.negf %119 : vector<8x128xf32>
    %121 = math.exp %120 : vector<8x128xf32>
    %cst_40 = arith.constant 1.000000e+00 : f32
    %122 = vector.broadcast %cst_40 : f32 to vector<8x128xf32>
    %123 = arith.addf %122, %121 : vector<8x128xf32>
    %124 = arith.divf %122, %123 : vector<8x128xf32>
    %125 = vector.extract_strided_slice %118 {offsets = [0, 128], sizes = [8, 128], strides = [1, 1]} : vector<8x512xf32> to vector<8x128xf32>
    %126 = arith.negf %125 : vector<8x128xf32>
    %127 = math.exp %126 : vector<8x128xf32>
    %cst_41 = arith.constant 1.000000e+00 : f32
    %128 = vector.broadcast %cst_41 : f32 to vector<8x128xf32>
    %129 = arith.addf %128, %127 : vector<8x128xf32>
    %130 = arith.divf %128, %129 : vector<8x128xf32>
    %131 = vector.extract_strided_slice %118 {offsets = [0, 256], sizes = [8, 128], strides = [1, 1]} : vector<8x512xf32> to vector<8x128xf32>
    %132 = math.tanh %131 : vector<8x128xf32>
    %133 = vector.extract_strided_slice %118 {offsets = [0, 384], sizes = [8, 128], strides = [1, 1]} : vector<8x512xf32> to vector<8x128xf32>
    %134 = arith.negf %133 : vector<8x128xf32>
    %135 = math.exp %134 : vector<8x128xf32>
    %cst_42 = arith.constant 1.000000e+00 : f32
    %136 = vector.broadcast %cst_42 : f32 to vector<8x128xf32>
    %137 = arith.addf %136, %135 : vector<8x128xf32>
    %138 = arith.divf %136, %137 : vector<8x128xf32>
    %139 = arith.mulf %130, %107 : vector<8x128xf32>
    %140 = arith.mulf %124, %132 : vector<8x128xf32>
    %141 = arith.addf %139, %140 : vector<8x128xf32>
    %142 = math.tanh %141 : vector<8x128xf32>
    %143 = arith.mulf %138, %142 : vector<8x128xf32>
    %144 = arith.index_cast %c3_i32 : i32 to index
    %c0_43 = arith.constant 0 : index
    %c0_44 = arith.constant 0 : index
    %145 = vector.load %arg7[%144, %c0_43, %c0_44] : memref<8x8x128xf32, #tpu.memory_space<vmem>>, vector<1x8x128xf32>
    %146 = vector.shape_cast %145 : vector<1x8x128xf32> to vector<8x128xf32>
    %147 = vector.shape_cast %143 : vector<8x128xf32> to vector<1x8x128xf32>
    tpu.vector_store %arg7[%144, %c0_43, %c0_44], %147 {strides = array<i32>} : memref<8x8x128xf32, #tpu.memory_space<vmem>>, vector<1x8x128xf32>,
    %c4_i32 = arith.constant 4 : i32
    %148 = arith.index_cast %c4_i32 : i32 to index
    %c0_45 = arith.constant 0 : index
    %c0_46 = arith.constant 0 : index
    %149 = vector.load %arg9[%148, %c0_45, %c0_46] : memref<8x8x512xf32, #tpu.memory_space<vmem>>, vector<1x8x512xf32>
    %150 = vector.shape_cast %149 : vector<1x8x512xf32> to vector<8x512xf32>
    %cst_47 = arith.constant dense<0.000000e+00> : vector<8x512xf32>
    %151 = tpu.matmul %143, %9, %cst_47 {dimension_numbers = #tpu.dot_dimension_numbers<[1], [0], [0], [1], [0, 0, 1, 1], [], []>} : vector<8x128xf32>, vector<128x512xf32>, vector<8x512xf32> -> vector<8x512xf32>
    %152 = arith.addf %150, %151 : vector<8x512xf32>
    %153 = vector.extract_strided_slice %152 {offsets = [0, 0], sizes = [8, 128], strides = [1, 1]} : vector<8x512xf32> to vector<8x128xf32>
    %154 = arith.negf %153 : vector<8x128xf32>
    %155 = math.exp %154 : vector<8x128xf32>
    %cst_48 = arith.constant 1.000000e+00 : f32
    %156 = vector.broadcast %cst_48 : f32 to vector<8x128xf32>
    %157 = arith.addf %156, %155 : vector<8x128xf32>
    %158 = arith.divf %156, %157 : vector<8x128xf32>
    %159 = vector.extract_strided_slice %152 {offsets = [0, 128], sizes = [8, 128], strides = [1, 1]} : vector<8x512xf32> to vector<8x128xf32>
    %160 = arith.negf %159 : vector<8x128xf32>
    %161 = math.exp %160 : vector<8x128xf32>
    %cst_49 = arith.constant 1.000000e+00 : f32
    %162 = vector.broadcast %cst_49 : f32 to vector<8x128xf32>
    %163 = arith.addf %162, %161 : vector<8x128xf32>
    %164 = arith.divf %162, %163 : vector<8x128xf32>
    %165 = vector.extract_strided_slice %152 {offsets = [0, 256], sizes = [8, 128], strides = [1, 1]} : vector<8x512xf32> to vector<8x128xf32>
    %166 = math.tanh %165 : vector<8x128xf32>
    %167 = vector.extract_strided_slice %152 {offsets = [0, 384], sizes = [8, 128], strides = [1, 1]} : vector<8x512xf32> to vector<8x128xf32>
    %168 = arith.negf %167 : vector<8x128xf32>
    %169 = math.exp %168 : vector<8x128xf32>
    %cst_50 = arith.constant 1.000000e+00 : f32
    %170 = vector.broadcast %cst_50 : f32 to vector<8x128xf32>
    %171 = arith.addf %170, %169 : vector<8x128xf32>
    %172 = arith.divf %170, %171 : vector<8x128xf32>
    %173 = arith.mulf %164, %141 : vector<8x128xf32>
    %174 = arith.mulf %158, %166 : vector<8x128xf32>
    %175 = arith.addf %173, %174 : vector<8x128xf32>
    %176 = math.tanh %175 : vector<8x128xf32>
    %177 = arith.mulf %172, %176 : vector<8x128xf32>
    %178 = arith.index_cast %c4_i32 : i32 to index
    %c0_51 = arith.constant 0 : index
    %c0_52 = arith.constant 0 : index
    %179 = vector.load %arg7[%178, %c0_51, %c0_52] : memref<8x8x128xf32, #tpu.memory_space<vmem>>, vector<1x8x128xf32>
    %180 = vector.shape_cast %179 : vector<1x8x128xf32> to vector<8x128xf32>
    %181 = vector.shape_cast %177 : vector<8x128xf32> to vector<1x8x128xf32>
    tpu.vector_store %arg7[%178, %c0_51, %c0_52], %181 {strides = array<i32>} : memref<8x8x128xf32, #tpu.memory_space<vmem>>, vector<1x8x128xf32>,
    %c5_i32 = arith.constant 5 : i32
    %182 = arith.index_cast %c5_i32 : i32 to index
    %c0_53 = arith.constant 0 : index
    %c0_54 = arith.constant 0 : index
    %183 = vector.load %arg9[%182, %c0_53, %c0_54] : memref<8x8x512xf32, #tpu.memory_space<vmem>>, vector<1x8x512xf32>
    %184 = vector.shape_cast %183 : vector<1x8x512xf32> to vector<8x512xf32>
    %cst_55 = arith.constant dense<0.000000e+00> : vector<8x512xf32>
    %185 = tpu.matmul %177, %9, %cst_55 {dimension_numbers = #tpu.dot_dimension_numbers<[1], [0], [0], [1], [0, 0, 1, 1], [], []>} : vector<8x128xf32>, vector<128x512xf32>, vector<8x512xf32> -> vector<8x512xf32>
    %186 = arith.addf %184, %185 : vector<8x512xf32>
    %187 = vector.extract_strided_slice %186 {offsets = [0, 0], sizes = [8, 128], strides = [1, 1]} : vector<8x512xf32> to vector<8x128xf32>
    %188 = arith.negf %187 : vector<8x128xf32>
    %189 = math.exp %188 : vector<8x128xf32>
    %cst_56 = arith.constant 1.000000e+00 : f32
    %190 = vector.broadcast %cst_56 : f32 to vector<8x128xf32>
    %191 = arith.addf %190, %189 : vector<8x128xf32>
    %192 = arith.divf %190, %191 : vector<8x128xf32>
    %193 = vector.extract_strided_slice %186 {offsets = [0, 128], sizes = [8, 128], strides = [1, 1]} : vector<8x512xf32> to vector<8x128xf32>
    %194 = arith.negf %193 : vector<8x128xf32>
    %195 = math.exp %194 : vector<8x128xf32>
    %cst_57 = arith.constant 1.000000e+00 : f32
    %196 = vector.broadcast %cst_57 : f32 to vector<8x128xf32>
    %197 = arith.addf %196, %195 : vector<8x128xf32>
    %198 = arith.divf %196, %197 : vector<8x128xf32>
    %199 = vector.extract_strided_slice %186 {offsets = [0, 256], sizes = [8, 128], strides = [1, 1]} : vector<8x512xf32> to vector<8x128xf32>
    %200 = math.tanh %199 : vector<8x128xf32>
    %201 = vector.extract_strided_slice %186 {offsets = [0, 384], sizes = [8, 128], strides = [1, 1]} : vector<8x512xf32> to vector<8x128xf32>
    %202 = arith.negf %201 : vector<8x128xf32>
    %203 = math.exp %202 : vector<8x128xf32>
    %cst_58 = arith.constant 1.000000e+00 : f32
    %204 = vector.broadcast %cst_58 : f32 to vector<8x128xf32>
    %205 = arith.addf %204, %203 : vector<8x128xf32>
    %206 = arith.divf %204, %205 : vector<8x128xf32>
    %207 = arith.mulf %198, %175 : vector<8x128xf32>
    %208 = arith.mulf %192, %200 : vector<8x128xf32>
    %209 = arith.addf %207, %208 : vector<8x128xf32>
    %210 = math.tanh %209 : vector<8x128xf32>
    %211 = arith.mulf %206, %210 : vector<8x128xf32>
    %212 = arith.index_cast %c5_i32 : i32 to index
    %c0_59 = arith.constant 0 : index
    %c0_60 = arith.constant 0 : index
    %213 = vector.load %arg7[%212, %c0_59, %c0_60] : memref<8x8x128xf32, #tpu.memory_space<vmem>>, vector<1x8x128xf32>
    %214 = vector.shape_cast %213 : vector<1x8x128xf32> to vector<8x128xf32>
    %215 = vector.shape_cast %211 : vector<8x128xf32> to vector<1x8x128xf32>
    tpu.vector_store %arg7[%212, %c0_59, %c0_60], %215 {strides = array<i32>} : memref<8x8x128xf32, #tpu.memory_space<vmem>>, vector<1x8x128xf32>,
    %c6_i32 = arith.constant 6 : i32
    %216 = arith.index_cast %c6_i32 : i32 to index
    %c0_61 = arith.constant 0 : index
    %c0_62 = arith.constant 0 : index
    %217 = vector.load %arg9[%216, %c0_61, %c0_62] : memref<8x8x512xf32, #tpu.memory_space<vmem>>, vector<1x8x512xf32>
    %218 = vector.shape_cast %217 : vector<1x8x512xf32> to vector<8x512xf32>
    %cst_63 = arith.constant dense<0.000000e+00> : vector<8x512xf32>
    %219 = tpu.matmul %211, %9, %cst_63 {dimension_numbers = #tpu.dot_dimension_numbers<[1], [0], [0], [1], [0, 0, 1, 1], [], []>} : vector<8x128xf32>, vector<128x512xf32>, vector<8x512xf32> -> vector<8x512xf32>
    %220 = arith.addf %218, %219 : vector<8x512xf32>
    %221 = vector.extract_strided_slice %220 {offsets = [0, 0], sizes = [8, 128], strides = [1, 1]} : vector<8x512xf32> to vector<8x128xf32>
    %222 = arith.negf %221 : vector<8x128xf32>
    %223 = math.exp %222 : vector<8x128xf32>
    %cst_64 = arith.constant 1.000000e+00 : f32
    %224 = vector.broadcast %cst_64 : f32 to vector<8x128xf32>
    %225 = arith.addf %224, %223 : vector<8x128xf32>
    %226 = arith.divf %224, %225 : vector<8x128xf32>
    %227 = vector.extract_strided_slice %220 {offsets = [0, 128], sizes = [8, 128], strides = [1, 1]} : vector<8x512xf32> to vector<8x128xf32>
    %228 = arith.negf %227 : vector<8x128xf32>
    %229 = math.exp %228 : vector<8x128xf32>
    %cst_65 = arith.constant 1.000000e+00 : f32
    %230 = vector.broadcast %cst_65 : f32 to vector<8x128xf32>
    %231 = arith.addf %230, %229 : vector<8x128xf32>
    %232 = arith.divf %230, %231 : vector<8x128xf32>
    %233 = vector.extract_strided_slice %220 {offsets = [0, 256], sizes = [8, 128], strides = [1, 1]} : vector<8x512xf32> to vector<8x128xf32>
    %234 = math.tanh %233 : vector<8x128xf32>
    %235 = vector.extract_strided_slice %220 {offsets = [0, 384], sizes = [8, 128], strides = [1, 1]} : vector<8x512xf32> to vector<8x128xf32>
    %236 = arith.negf %235 : vector<8x128xf32>
    %237 = math.exp %236 : vector<8x128xf32>
    %cst_66 = arith.constant 1.000000e+00 : f32
    %238 = vector.broadcast %cst_66 : f32 to vector<8x128xf32>
    %239 = arith.addf %238, %237 : vector<8x128xf32>
    %240 = arith.divf %238, %239 : vector<8x128xf32>
    %241 = arith.mulf %232, %209 : vector<8x128xf32>
    %242 = arith.mulf %226, %234 : vector<8x128xf32>
    %243 = arith.addf %241, %242 : vector<8x128xf32>
    %244 = math.tanh %243 : vector<8x128xf32>
    %245 = arith.mulf %240, %244 : vector<8x128xf32>
    %246 = arith.index_cast %c6_i32 : i32 to index
    %c0_67 = arith.constant 0 : index
    %c0_68 = arith.constant 0 : index
    %247 = vector.load %arg7[%246, %c0_67, %c0_68] : memref<8x8x128xf32, #tpu.memory_space<vmem>>, vector<1x8x128xf32>
    %248 = vector.shape_cast %247 : vector<1x8x128xf32> to vector<8x128xf32>
    %249 = vector.shape_cast %245 : vector<8x128xf32> to vector<1x8x128xf32>
    tpu.vector_store %arg7[%246, %c0_67, %c0_68], %249 {strides = array<i32>} : memref<8x8x128xf32, #tpu.memory_space<vmem>>, vector<1x8x128xf32>,
    %c7_i32 = arith.constant 7 : i32
    %250 = arith.index_cast %c7_i32 : i32 to index
    %c0_69 = arith.constant 0 : index
    %c0_70 = arith.constant 0 : index
    %251 = vector.load %arg9[%250, %c0_69, %c0_70] : memref<8x8x512xf32, #tpu.memory_space<vmem>>, vector<1x8x512xf32>
    %252 = vector.shape_cast %251 : vector<1x8x512xf32> to vector<8x512xf32>
    %cst_71 = arith.constant dense<0.000000e+00> : vector<8x512xf32>
    %253 = tpu.matmul %245, %9, %cst_71 {dimension_numbers = #tpu.dot_dimension_numbers<[1], [0], [0], [1], [0, 0, 1, 1], [], []>} : vector<8x128xf32>, vector<128x512xf32>, vector<8x512xf32> -> vector<8x512xf32>
    %254 = arith.addf %252, %253 : vector<8x512xf32>
    %255 = vector.extract_strided_slice %254 {offsets = [0, 0], sizes = [8, 128], strides = [1, 1]} : vector<8x512xf32> to vector<8x128xf32>
    %256 = arith.negf %255 : vector<8x128xf32>
    %257 = math.exp %256 : vector<8x128xf32>
    %cst_72 = arith.constant 1.000000e+00 : f32
    %258 = vector.broadcast %cst_72 : f32 to vector<8x128xf32>
    %259 = arith.addf %258, %257 : vector<8x128xf32>
    %260 = arith.divf %258, %259 : vector<8x128xf32>
    %261 = vector.extract_strided_slice %254 {offsets = [0, 128], sizes = [8, 128], strides = [1, 1]} : vector<8x512xf32> to vector<8x128xf32>
    %262 = arith.negf %261 : vector<8x128xf32>
    %263 = math.exp %262 : vector<8x128xf32>
    %cst_73 = arith.constant 1.000000e+00 : f32
    %264 = vector.broadcast %cst_73 : f32 to vector<8x128xf32>
    %265 = arith.addf %264, %263 : vector<8x128xf32>
    %266 = arith.divf %264, %265 : vector<8x128xf32>
    %267 = vector.extract_strided_slice %254 {offsets = [0, 256], sizes = [8, 128], strides = [1, 1]} : vector<8x512xf32> to vector<8x128xf32>
    %268 = math.tanh %267 : vector<8x128xf32>
    %269 = vector.extract_strided_slice %254 {offsets = [0, 384], sizes = [8, 128], strides = [1, 1]} : vector<8x512xf32> to vector<8x128xf32>
    %270 = arith.negf %269 : vector<8x128xf32>
    %271 = math.exp %270 : vector<8x128xf32>
    %cst_74 = arith.constant 1.000000e+00 : f32
    %272 = vector.broadcast %cst_74 : f32 to vector<8x128xf32>
    %273 = arith.addf %272, %271 : vector<8x128xf32>
    %274 = arith.divf %272, %273 : vector<8x128xf32>
    %275 = arith.mulf %266, %243 : vector<8x128xf32>
    %276 = arith.mulf %260, %268 : vector<8x128xf32>
    %277 = arith.addf %275, %276 : vector<8x128xf32>
    %278 = math.tanh %277 : vector<8x128xf32>
    %279 = arith.mulf %274, %278 : vector<8x128xf32>
    %280 = arith.index_cast %c7_i32 : i32 to index
    %c0_75 = arith.constant 0 : index
    %c0_76 = arith.constant 0 : index
    %281 = vector.load %arg7[%280, %c0_75, %c0_76] : memref<8x8x128xf32, #tpu.memory_space<vmem>>, vector<1x8x128xf32>
    %282 = vector.shape_cast %281 : vector<1x8x128xf32> to vector<8x128xf32>
    %283 = vector.shape_cast %279 : vector<8x128xf32> to vector<1x8x128xf32>
    tpu.vector_store %arg7[%280, %c0_75, %c0_76], %283 {strides = array<i32>} : memref<8x8x128xf32, #tpu.memory_space<vmem>>, vector<1x8x128xf32>,
    %c8_i32 = arith.constant 8 : i32
    %c0_77 = arith.constant 0 : index
    %c0_78 = arith.constant 0 : index
    %c0_79 = arith.constant 0 : index
    %284 = vector.load %arg7[%c0_77, %c0_78, %c0_79] : memref<8x8x128xf32, #tpu.memory_space<vmem>>, vector<8x8x128xf32>
    %c0_80 = arith.constant 0 : index
    %c0_81 = arith.constant 0 : index
    %285 = vector.load %arg5[%c0_80, %c0_81] : memref<1x128xf32, #tpu.memory_space<vmem>>, vector<1x128xf32>
    %286 = vector.shape_cast %285 : vector<1x128xf32> to vector<1x1x128xf32>
    %287 = vector.broadcast %286 : vector<1x1x128xf32> to vector<8x8x128xf32>
    %288 = arith.mulf %284, %287 : vector<8x8x128xf32>
    %cst_82 = arith.constant dense<0.000000e+00> : vector<8x8xf32>
    %289 = vector.multi_reduction <add>, %288, %cst_82 [2] : vector<8x8x128xf32> to vector<8x8xf32>
    %c0_83 = arith.constant 0 : index
    %c0_84 = arith.constant 0 : index
    %290 = vector.load %arg6[%c0_83, %c0_84] : memref<1x1xf32, #tpu.memory_space<vmem>>, vector<1x1xf32>
    %291 = vector.broadcast %290 : vector<1x1xf32> to vector<8x8xf32>
    %292 = arith.addf %289, %291 : vector<8x8xf32>
    %293 = arith.negf %292 : vector<8x8xf32>
    %294 = math.exp %293 : vector<8x8xf32>
    %cst_85 = arith.constant 1.000000e+00 : f32
    %295 = vector.broadcast %cst_85 : f32 to vector<8x8xf32>
    %296 = arith.addf %295, %294 : vector<8x8xf32>
    %297 = arith.divf %295, %296 : vector<8x8xf32>
    %298 = tpu.transpose %297, [1, 0] : vector<8x8xf32> -> vector<8x8xf32>
    %c0_86 = arith.constant 0 : index
    %c0_87 = arith.constant 0 : index
    %299 = vector.load %arg8[%c0_86, %c0_87] : memref<8x8xf32, #tpu.memory_space<vmem>>, vector<8x8xf32>
    tpu.vector_store %arg8[%c0_86, %c0_87], %298 {strides = array<i32>} : memref<8x8xf32, #tpu.memory_space<vmem>>, vector<8x8xf32>,
    return
  }
  func.func @transform_0(%arg0: i32) -> (i32, i32, i32) {
    %c0_i32 = arith.constant 0 : i32
    %c0_i32_0 = arith.constant 0 : i32
    %c0_i32_1 = arith.constant 0 : i32
    return %c0_i32, %arg0, %c0_i32_0 : i32, i32, i32
  }
  func.func @transform_1(%arg0: i32) -> (i32, i32) {
    %c0_i32 = arith.constant 0 : i32
    %c0_i32_0 = arith.constant 0 : i32
    %c0_i32_1 = arith.constant 0 : i32
    return %c0_i32, %c0_i32_0 : i32, i32
  }
  func.func @transform_2(%arg0: i32) -> (i32, i32) {
    %c0_i32 = arith.constant 0 : i32
    %c0_i32_0 = arith.constant 0 : i32
    %c0_i32_1 = arith.constant 0 : i32
    return %c0_i32, %c0_i32_0 : i32, i32
  }
  func.func @transform_3(%arg0: i32) -> (i32, i32) {
    %c0_i32 = arith.constant 0 : i32
    %c0_i32_0 = arith.constant 0 : i32
    %c0_i32_1 = arith.constant 0 : i32
    return %c0_i32, %c0_i32_0 : i32, i32
  }
  func.func @transform_4(%arg0: i32) -> (i32, i32) {
    %c0_i32 = arith.constant 0 : i32
    %c0_i32_0 = arith.constant 0 : i32
    %c0_i32_1 = arith.constant 0 : i32
    return %c0_i32, %c0_i32_0 : i32, i32
  }
  func.func @transform_5(%arg0: i32) -> (i32, i32) {
    %c0_i32 = arith.constant 0 : i32
    %c0_i32_0 = arith.constant 0 : i32
    %c0_i32_1 = arith.constant 0 : i32
    return %c0_i32, %c0_i32_0 : i32, i32
  }
  func.func @transform_6(%arg0: i32) -> (i32, i32, i32) {
    %c0_i32 = arith.constant 0 : i32
    %c0_i32_0 = arith.constant 0 : i32
    %c0_i32_1 = arith.constant 0 : i32
    return %c0_i32, %arg0, %c0_i32_0 : i32, i32, i32
  }
  func.func @transform_7(%arg0: i32) -> (i32, i32) {
    %c0_i32 = arith.constant 0 : i32
    %c0_i32_0 = arith.constant 0 : i32
    return %arg0, %c0_i32 : i32, i32
  }
}

</mosaic_0001>

<bundles_post_ra>
// kernel: tpu_custom_call.1
= control target key start
LH: loop header
LB: loop body
LE: loop exit
PB: predicated region body
PF: predicated region fallthrough
CT: control target
= control target key end

     0   :  { %s3531_s0 = inlined_call_operand.vmem [shape: f32[8,8,4], index: 0, kind: input, shape index: {}]   ;;  %s3532_s1 = inlined_call_operand.vmem [shape: f32[4,512], index: 1, kind: input, shape index: {}]   ;;  %s3533_s2 = inlined_call_operand.hbm [shape: f32[128,512], index: 2, kind: input, shape index: {}]   ;;  %s3534_s3 = inlined_call_operand.vmem [shape: f32[1,512], index: 3, kind: input, shape index: {}]   ;;  %s3535_s4 = inlined_call_operand.vmem [shape: f32[1,128], index: 4, kind: input, shape index: {}]   ;;  %s3536_s5 = inlined_call_operand.<no memory space> [shape: f32[1,1], index: 5, kind: input, shape index: {}]   ;;  %s3537_s6 = inlined_call_operand.hbm [shape: f32[8,8,128], index: 6, kind: output, shape index: {0}]   ;;  %s3538_s7 = inlined_call_operand.hbm [shape: f32[8,8], index: 7, kind: output, shape index: {1}]  }
   0x1   :  { %v13_v0 = vstv %s3536_s5 }
   0x2   :  { %14 = vst [vmem:[#allocation3] sm:$0x1] %v13_v0 }
   0x3   :  { %15 = vsyncpa [#allocation5], 0 }
   0x4   :  { %16 = vsyncpa [#allocation6], 0 }
   0x5   :  { %17 = vsyncpa [#allocation9], 0  ;;  %s2950_s26 = smov [#allocation4]   ;;  %s2878_s30 = scalar_lea.hbm %s3533_s2, 8192 }
   0x6   :  { %s27_s27 = sshll.u32 %s2950_s26, 4  ;;  %p2879_p0 = scmp.ne.s32.totalorder %s3533_s2, %s2878_s30  ;;  %s28_s27 = int_to_ptr.vmem [resolvable:$true] %s27_s27 }
   0x7   :  { %p2882_p1 = scmp.lt.u32.totalorder %s2878_s30, %s3533_s2 }
   0x9   :  { %p2884_p2 = pnand %p2882_p1, %p2879_p0 }
   0xb   :  { %2887 = shalt.err (!%p2884_p2)
}
   0xc   :  { %s2888_s5 = scalar_lea.vmem %s28_s27, 8192  ;;  %p2893_p4 = scmp.lt.s32.totalorder %s28_s27, %s28_s27 }
   0xd   :  { %p2889_p3 = scmp.ne.s32.totalorder %s28_s27, %s2888_s5  ;;  %p2894_p5 = scmp.lt.s32.totalorder %s2888_s5, %s2888_s5 }
   0xf   :  { %p2895_p6 = por %p2894_p5, %p2893_p4 }
  0x11   :  { %p2896_p7 = pnand %p2895_p6, %p2889_p3 }
  0x13   :  { %2899 = shalt.err (!%p2896_p7)
}
  0x14   :  { %s2951_s12 = smov 512   ;;  %s2952_s13 = smov 32  }
  0x15   :  { %33 = dma.hbm_to_vmem [thread:$0]  %s3533_s2, 8192, %s28_s27, [#allocation5], %s2951_s12, %s2951_s12, %s2952_s13  }
  0x16   :  { %2944 = dma.done.wait [#allocation5], 8192  }
  0x17   :  { %2945 = vsyncadd [#allocation5], 4294959104  ;;  %v2953_v1 = vmov 0.0   ;;  %v51_v2 = vld [vmem:[%s3532_s1] sm:$0xff]  ;;  %vm104_vm0 = vcmask 1043456   ;;  %v52_v3 = vld [vmem:[%s3532_s1 + $0x8] sm:$0xff] }
  0x18   :  { %177 = vmatprep.mubr.f32.mxu0 %v2953_v1  ;;  %290 = vmatprep.mubr.f32.mxu1 %v2953_v1  ;;  %v43_v4 = vld [vmem:[%s3531_s0] sm:$0xff]  ;;  %v77_v5 = vcombine.high %v51_v2, %v51_v2  ;;  %v78_v6 = vcombine.high %v52_v3, %v52_v3  ;;  %v372_v7 = vld [vmem:[#allocation4 + $0x8] sm:$0xff]  ;;  %vm79_vm1 = vcmask 31744   ;;  %v373_v16 = vld [vmem:[#allocation4 + $0x10] sm:$0xff]  ;;  %vm1996_vm2 = vcmask 1041409  }
  0x19   :  { %v376_v8 = vld [vmem:[#allocation4 + $0x28] sm:$0xff]  ;;  %v374_v9 = vld [vmem:[#allocation4 + $0x18] sm:$0xff]  ;;  %v371_v12 = vld [vmem:[#allocation4] sm:$0xff]  ;;  %vm1998_vm3 = vcmask 1042434   ;;  %vm2000_vm4 = vcmask 1043459   ;;  %vm2002_vm5 = vcmask 1044484  }
  0x1a   :  { %v3025_v10 = vpack.c.bf16 %v376_v8, %v372_v7  ;;  %v378_v11 = vld [vmem:[#allocation4 + $0x38] sm:$0xff]  ;;  %v375_v13 = vld [vmem:[#allocation4 + $0x20] sm:$0xff]  ;;  %2076 = vmatprep.subr.msk.mxu0 %vm104_vm0, %v77_v5  ;;  %2086 = vmatprep.subr.msk.mxu1 %vm104_vm0, %v78_v6  ;;  %v377_v17 = vld [vmem:[#allocation4 + $0x30] sm:$0xff]  ;;  %vm2004_vm6 = vcmask 1045509   ;;  %vm2006_vm7 = vcmask 1046534   ;;  %vm2008_vm8 = vcmask 1047559  }
  0x1b   :  { %v3029_v14 = vpack.c.bf16 %v378_v11, %v374_v9  ;;  %v3031_v15 = vpack.c.bf16 %v375_v13, %v371_v12  ;;  %2077 = vmatpush1.msk.msra.mxu0 %vm104_vm0, %v51_v2  ;;  %2087 = vmatpush1.msk.msra.mxu1 %vm104_vm0, %v52_v3  ;;  %v3035_v18 = vpack.c.bf16 %v377_v17, %v373_v16  ;;  %v380_v19 = vld [vmem:[#allocation4 + $0x48] sm:$0xff]  ;;  %v382_v21 = vld [vmem:[#allocation4 + $0x58] sm:$0xff]  ;;  %v379_v23 = vld [vmem:[#allocation4 + $0x40] sm:$0xff] }
  0x1c   :  { %v384_v20 = vld [vmem:[#allocation4 + $0x68] sm:$0xff]  ;;  %2078 = vmatmul.mubr.msk.f32.vlgmr.msra.gmra.mrb[0].mxu0 %vm79_vm1, %v43_v4  ;;  %2088 = vmatmul.mubr.msk.f32.vlgmr.msra.gmra.mrb[0].mxu1 %vm79_vm1, %v43_v4  ;;  %v386_v22 = vld [vmem:[#allocation4 + $0x78] sm:$0xff]  ;;  %v383_v24 = vld [vmem:[#allocation4 + $0x60] sm:$0xff] }
  0x1d   :  { %2131 = vmatprep.subr.bf16.mxu0 %v3025_v10  ;;  %2163 = vmatprep.subr.bf16.mxu1 %v3029_v14  ;;  %v44_v25 = vld [vmem:[%s3531_s0 + $0x8] sm:$0xff]  ;;  %v3044_v26 = vpack.c.bf16 %v384_v20, %v380_v19  ;;  %v3046_v27 = vpack.c.bf16 %v386_v22, %v382_v21  ;;  %v381_v28 = vld [vmem:[#allocation4 + $0x50] sm:$0xff]  ;;  %v3050_v30 = vpack.c.bf16 %v383_v24, %v379_v23  ;;  %v390_v34 = vld [vmem:[#allocation4 + $0x98] sm:$0xff] }
  0x1e   :  { %v385_v29 = vld [vmem:[#allocation4 + $0x70] sm:$0xff]  ;;  %2133 = vmatpush1.bf16.msra.mxu0 %v3031_v15  ;;  %2165 = vmatpush1.bf16.msra.mxu1 %v3035_v18  ;;  %v388_v32 = vld [vmem:[#allocation4 + $0x88] sm:$0xff]  ;;  %v394_v35 = vld [vmem:[#allocation4 + $0xb8] sm:$0xff] }
  0x1f   :  { %v3052_v31 = vpack.c.bf16 %v385_v29, %v381_v28  ;;  %v392_v33 = vld [vmem:[#allocation4 + $0xa8] sm:$0xff]  ;;  %183 = vmatprep.mubr.f32.mxu0 %v2953_v1  ;;  %296 = vmatprep.mubr.f32.mxu1 %v2953_v1  ;;  %v387_v36 = vld [vmem:[#allocation4 + $0x80] sm:$0xff]  ;;  %v389_v38 = vld [vmem:[#allocation4 + $0x90] sm:$0xff]  ;;  %v3065_v42 = vpack.c.bf16 %v394_v35, %v390_v34 }
  0x20   :  { %v391_v37 = vld [vmem:[#allocation4 + $0xa0] sm:$0xff]  ;;  %2079 = vmatmul.mubr.msk.f32.gmra.mrb[2].mxu0 %vm79_vm1, %v44_v25  ;;  %2089 = vmatmul.mubr.msk.f32.gmra.mrb[2].mxu1 %vm79_vm1, %v44_v25  ;;  %v393_v39 = vld [vmem:[#allocation4 + $0xb0] sm:$0xff]  ;;  %v3063_v41 = vpack.c.bf16 %v392_v33, %v388_v32  ;;  %v396_v43 = vld [vmem:[#allocation4 + $0xc8] sm:$0xff] }
  0x21   :  { %2135 = vmatprep.subr.bf16.mxu0 %v3044_v26  ;;  %2167 = vmatprep.subr.bf16.mxu1 %v3046_v27  ;;  %v45_v40 = vld [vmem:[%s3531_s0 + $0x10] sm:$0xff]  ;;  %v3069_v45 = vpack.c.bf16 %v391_v37, %v387_v36  ;;  %v3071_v46 = vpack.c.bf16 %v393_v39, %v389_v38  ;;  %v398_v47 = vld [vmem:[#allocation4 + $0xd8] sm:$0xff]  ;;  %v395_v49 = vld [vmem:[#allocation4 + $0xc0] sm:$0xff] }
  0x22   :  { %v400_v44 = vld [vmem:[#allocation4 + $0xe8] sm:$0xff]  ;;  %2137 = vmatpush1.bf16.msra.mxu0 %v3050_v30  ;;  %2169 = vmatpush1.bf16.msra.mxu1 %v3052_v31  ;;  %v402_v48 = vld [vmem:[#allocation4 + $0xf8] sm:$0xff]  ;;  %v399_v50 = vld [vmem:[#allocation4 + $0xe0] sm:$0xff] }
  0x23   :  { %189 = vmatprep.mubr.f32.mxu0 %v2953_v1  ;;  %302 = vmatprep.mubr.f32.mxu1 %v2953_v1  ;;  %v397_v51 = vld [vmem:[#allocation4 + $0xd0] sm:$0xff]  ;;  %v3082_v54 = vpack.c.bf16 %v400_v44, %v396_v43  ;;  %v3084_v55 = vpack.c.bf16 %v402_v48, %v398_v47  ;;  %v404_v56 = vld [vmem:[#allocation4 + $0x108] sm:$0xff]  ;;  %v3088_v58 = vpack.c.bf16 %v399_v50, %v395_v49  ;;  %v406_v60 = vld [vmem:[#allocation4 + $0x118] sm:$0xff] }
  0x24   :  { %v401_v52 = vld [vmem:[#allocation4 + $0xf0] sm:$0xff]  ;;  %2080 = vmatmul.mubr.msk.f32.gmra.mrb[4].mxu0 %vm79_vm1, %v45_v40  ;;  %2090 = vmatmul.mubr.msk.f32.gmra.mrb[4].mxu1 %vm79_vm1, %v45_v40  ;;  %v408_v57 = vld [vmem:[#allocation4 + $0x128] sm:$0xff]  ;;  %v410_v61 = vld [vmem:[#allocation4 + $0x138] sm:$0xff] }
  0x25   :  { %2139 = vmatprep.subr.bf16.mxu0 %v3063_v41  ;;  %2171 = vmatprep.subr.bf16.mxu1 %v3065_v42  ;;  %v46_v53 = vld [vmem:[%s3531_s0 + $0x18] sm:$0xff]  ;;  %v3090_v59 = vpack.c.bf16 %v401_v52, %v397_v51  ;;  %v403_v62 = vld [vmem:[#allocation4 + $0x100] sm:$0xff]  ;;  %v3101_v4 = vpack.c.bf16 %v408_v57, %v404_v56  ;;  %v3103_v5 = vpack.c.bf16 %v410_v61, %v406_v60  ;;  %v412_v6 = vld [vmem:[#allocation4 + $0x148] sm:$0xff] }
  0x26   :  { %2141 = vmatpush1.bf16.msra.mxu0 %v3069_v45  ;;  %2173 = vmatpush1.bf16.msra.mxu1 %v3071_v46  ;;  %v407_v63 = vld [vmem:[#allocation4 + $0x120] sm:$0xff]  ;;  %v405_v0 = vld [vmem:[#allocation4 + $0x110] sm:$0xff]  ;;  %v416_v7 = vld [vmem:[#allocation4 + $0x168] sm:$0xff] }
  0x27   :  { %195 = vmatprep.mubr.f32.mxu0 %v2953_v1  ;;  %308 = vmatprep.mubr.f32.mxu1 %v2953_v1  ;;  %v409_v2 = vld [vmem:[#allocation4 + $0x130] sm:$0xff]  ;;  %v47_v3 = vld [vmem:[%s3531_s0 + $0x20] sm:$0xff]  ;;  %v3107_v8 = vpack.c.bf16 %v407_v63, %v403_v62  ;;  %v48_v20 = vld [vmem:[%s3531_s0 + $0x28] sm:$0xff]  ;;  %v3120_v21 = vpack.c.bf16 %v416_v7, %v412_v6  ;;  %v55_v63 = vlaneseq }
  0x28   :  { %2081 = vmatmul.mubr.msk.f32.gmra.mrb[6].mxu0 %vm79_vm1, %v46_v53  ;;  %2091 = vmatmul.mubr.msk.f32.gmra.mrb[6].mxu1 %vm79_vm1, %v46_v53  ;;  %v3109_v9 = vpack.c.bf16 %v409_v2, %v405_v0  ;;  %v414_v11 = vld [vmem:[#allocation4 + $0x158] sm:$0xff]  ;;  %v411_v13 = vld [vmem:[#allocation4 + $0x140] sm:$0xff]  ;;  %v413_v17 = vld [vmem:[#allocation4 + $0x150] sm:$0xff] }
  0x29   :  { %2143 = vmatprep.subr.bf16.mxu0 %v3082_v54  ;;  %2175 = vmatprep.subr.bf16.mxu1 %v3084_v55  ;;  %v418_v12 = vld [vmem:[#allocation4 + $0x178] sm:$0xff]  ;;  %v415_v16 = vld [vmem:[#allocation4 + $0x160] sm:$0xff]  ;;  %v417_v19 = vld [vmem:[#allocation4 + $0x170] sm:$0xff]  ;;  %v3217_v0 = vshrl.u32 %v55_v63, 7 }
  0x2a   :  { %2145 = vmatpush1.bf16.msra.mxu0 %v3088_v58  ;;  %2177 = vmatpush1.bf16.msra.mxu1 %v3090_v59  ;;  %v3122_v22 = vpack.c.bf16 %v418_v12, %v414_v11  ;;  %v420_v23 = vld [vmem:[#allocation4 + $0x188] sm:$0xff]  ;;  %v3126_v25 = vpack.c.bf16 %v415_v16, %v411_v13  ;;  %v3128_v28 = vpack.c.bf16 %v417_v19, %v413_v17  ;;  %v422_v29 = vld [vmem:[#allocation4 + $0x198] sm:$0xff]  ;;  %v419_v33 = vld [vmem:[#allocation4 + $0x180] sm:$0xff] }
  0x2b   :  { %201 = vmatprep.mubr.f32.mxu0 %v2953_v1  ;;  %314 = vmatprep.mubr.f32.mxu1 %v2953_v1  ;;  %v424_v24 = vld [vmem:[#allocation4 + $0x1a8] sm:$0xff]  ;;  %v426_v32 = vld [vmem:[#allocation4 + $0x1b8] sm:$0xff]  ;;  %v423_v34 = vld [vmem:[#allocation4 + $0x1a0] sm:$0xff]  ;;  %v57_v2 = vsub.s32 0, %v3217_v0  ;;  %v61_v6 = vsub.s32 1, %v3217_v0  ;;  %v69_v16 = vsub.s32 3, %v3217_v0 }
  0x2c   :  { %2082 = vmatmul.mubr.msk.f32.gmra.mrb[8].mxu0 %vm79_vm1, %v47_v3  ;;  %2092 = vmatmul.mubr.msk.f32.gmra.mrb[8].mxu1 %vm79_vm1, %v47_v3  ;;  %v421_v35 = vld [vmem:[#allocation4 + $0x190] sm:$0xff]  ;;  %v3139_v38 = vpack.c.bf16 %v424_v24, %v420_v23  ;;  %v3141_v39 = vpack.c.bf16 %v426_v32, %v422_v29  ;;  %v428_v40 = vld [vmem:[#allocation4 + $0x1c8] sm:$0xff]  ;;  %v3145_v44 = vpack.c.bf16 %v423_v34, %v419_v33  ;;  %v430_v48 = vld [vmem:[#allocation4 + $0x1d8] sm:$0xff]  ;;  %v65_v33 = vsub.s32 2, %v3217_v0 }
  0x2d   :  { %2147 = vmatprep.subr.bf16.mxu0 %v3101_v4  ;;  %2179 = vmatprep.subr.bf16.mxu1 %v3103_v5  ;;  %v425_v36 = vld [vmem:[#allocation4 + $0x1b0] sm:$0xff]  ;;  %v432_v43 = vld [vmem:[#allocation4 + $0x1e8] sm:$0xff]  ;;  %v434_v49 = vld [vmem:[#allocation4 + $0x1f8] sm:$0xff] }
  0x2e   :  { %2149 = vmatpush1.bf16.msra.mxu0 %v3107_v8  ;;  %2181 = vmatpush1.bf16.msra.mxu1 %v3109_v9  ;;  %v49_v37 = vld [vmem:[%s3531_s0 + $0x30] sm:$0xff]  ;;  %v3147_v47 = vpack.c.bf16 %v425_v36, %v421_v35  ;;  %v427_v50 = vld [vmem:[#allocation4 + $0x1c0] sm:$0xff]  ;;  %v50_v56 = vld [vmem:[%s3531_s0 + $0x38] sm:$0xff]  ;;  %v3158_v57 = vpack.c.bf16 %v432_v43, %v428_v40  ;;  %v3160_v60 = vpack.c.bf16 %v434_v49, %v430_v48 }
  0x2f   :  { %207 = vmatprep.mubr.f32.mxu0 %v2953_v1  ;;  %320 = vmatprep.mubr.f32.mxu1 %v2953_v1  ;;  %v431_v51 = vld [vmem:[#allocation4 + $0x1e0] sm:$0xff]  ;;  %v429_v52 = vld [vmem:[#allocation4 + $0x1d0] sm:$0xff] }
  0x30   :  { %2083 = vmatmul.mubr.msk.f32.gmra.mrb[10].mxu0 %vm79_vm1, %v48_v20  ;;  %2093 = vmatmul.mubr.msk.f32.gmra.mrb[10].mxu1 %vm79_vm1, %v48_v20  ;;  %v433_v53 = vld [vmem:[#allocation4 + $0x1f0] sm:$0xff]  ;;  %v3164_v61 = vpack.c.bf16 %v431_v51, %v427_v50  ;;  %v53_v3 = vld [vmem:[%s3534_s3] sm:$0xf] }
  0x31   :  { %2151 = vmatprep.subr.bf16.mxu0 %v3120_v21  ;;  %2183 = vmatprep.subr.bf16.mxu1 %v3122_v22  ;;  %v3166_v62 = vpack.c.bf16 %v433_v53, %v429_v52  ;;  %v3224_v7 = vrot.slane %v53_v3, %v57_v2  ;;  %v3226_v11 = vrot.slane %v53_v3, %v61_v6 }
  0x32   :  { %2153 = vmatpush1.bf16.msra.mxu0 %v3126_v25  ;;  %2185 = vmatpush1.bf16.msra.mxu1 %v3128_v28  ;;  %v3231_v32 = vrot.slane %v53_v3, %v69_v16  ;;  %v3235_v35 = vrot.slane %v53_v3, %v65_v33  ;;  %v3244_v16 = vld [vmem:[%s3535_s4] ss:$0 sm:$0xff]  ;;  %s2955_s4 = smov [#allocation7]  }
  0x33   :  { %213 = vmatprep.mubr.f32.mxu0 %v2953_v1  ;;  %326 = vmatprep.mubr.f32.mxu1 %v2953_v1  ;;  %s2050_s12 = sshll.u32 %s2955_s4, 4  ;;  %s2051_s12 = int_to_ptr.vmem [resolvable:$true] %s2050_s12 }
  0x34   :  { %2084 = vmatmul.mubr.msk.f32.gmra.mrb[12].mxu0 %vm79_vm1, %v49_v37  ;;  %2094 = vmatmul.mubr.msk.f32.gmra.mrb[12].mxu1 %vm79_vm1, %v49_v37  ;;  %s2900_s13 = scalar_lea.vmem %s2051_s12, 1024  ;;  %p2905_p9 = scmp.lt.s32.totalorder %s2051_s12, %s2051_s12 }
  0x35   :  { %2155 = vmatprep.subr.bf16.mxu0 %v3139_v38  ;;  %2187 = vmatprep.subr.bf16.mxu1 %v3141_v39  ;;  %p2901_p8 = scmp.ne.s32.totalorder %s2051_s12, %s2900_s13  ;;  %p2906_p10 = scmp.lt.s32.totalorder %s2900_s13, %s2900_s13 }
  0x36   :  { %2157 = vmatpush1.bf16.msra.mxu0 %v3145_v44  ;;  %2189 = vmatpush1.bf16.msra.mxu1 %v3147_v47 }
  0x37   :  { %219 = vmatprep.mubr.f32.mxu0 %v2953_v1  ;;  %332 = vmatprep.mubr.f32.mxu1 %v2953_v1  ;;  %p2907_p11 = por %p2906_p10, %p2905_p9 }
  0x38   :  { %2085 = vmatmul.mubr.msk.f32.gmra.mrb[14].mxu0 %vm79_vm1, %v50_v56  ;;  %2095 = vmatmul.mubr.msk.f32.gmra.mrb[14].mxu1 %vm79_vm1, %v50_v56 }
  0x39   :  { %2159 = vmatprep.subr.bf16.mxu0 %v3158_v57  ;;  %2191 = vmatprep.subr.bf16.mxu1 %v3160_v60  ;;  %p2908_p12 = pnand %p2907_p11, %p2901_p8 }
  0x3a   :  { %2161 = vmatpush1.bf16.msra.mxu0 %v3164_v61  ;;  %2193 = vmatpush1.bf16.msra.mxu1 %v3166_v62 }
  0x3b   :  { %503 = vmatprep.mubr.f32.mxu0 %v2953_v1  ;;  %574 = vmatprep.mubr.f32.mxu1 %v2953_v1 }
  0x3c   :  { %2195 = vmatprep.subr.bf16.mxu0 %v3025_v10  ;;  %2227 = vmatprep.subr.bf16.mxu1 %v3029_v14 }
  0x3d   :  { %504 = vmatmul.mubr.f32.vlgmr.msra.gmra.mrb[0].mxu0 %v2953_v1  ;;  %575 = vmatmul.mubr.f32.vlgmr.msra.gmra.mrb[0].mxu1 %v2953_v1 }
  0x3e   :  { %2197 = vmatpush1.bf16.msra.mxu0 %v3031_v15  ;;  %2229 = vmatpush1.bf16.msra.mxu1 %v3035_v18 }
  0x3f   :  { %2199 = vmatprep.subr.bf16.mxu0 %v3044_v26  ;;  %2231 = vmatprep.subr.bf16.mxu1 %v3046_v27 }
  0x40   :  { %679 = vmatprep.mubr.f32.mxu0 %v2953_v1  ;;  %750 = vmatprep.mubr.f32.mxu1 %v2953_v1 }
  0x42   :  { %2201 = vmatpush1.bf16.msra.mxu0 %v3050_v30  ;;  %2233 = vmatpush1.bf16.msra.mxu1 %v3052_v31 }
  0x43   :  { %2203 = vmatprep.subr.bf16.mxu0 %v3063_v41  ;;  %2235 = vmatprep.subr.bf16.mxu1 %v3065_v42 }
  0x46   :  { %2205 = vmatpush1.bf16.msra.mxu0 %v3069_v45  ;;  %2237 = vmatpush1.bf16.msra.mxu1 %v3071_v46 }
  0x47   :  { %2207 = vmatprep.subr.bf16.mxu0 %v3082_v54  ;;  %2239 = vmatprep.subr.bf16.mxu1 %v3084_v55 }
  0x4a   :  { %2209 = vmatpush1.bf16.msra.mxu0 %v3088_v58  ;;  %2241 = vmatpush1.bf16.msra.mxu1 %v3090_v59 }
  0x4b   :  { %2211 = vmatprep.subr.bf16.mxu0 %v3101_v4  ;;  %2243 = vmatprep.subr.bf16.mxu1 %v3103_v5 }
  0x4e   :  { %2213 = vmatpush1.bf16.msra.mxu0 %v3107_v8  ;;  %2245 = vmatpush1.bf16.msra.mxu1 %v3109_v9 }
  0x4f   :  { %2215 = vmatprep.subr.bf16.mxu0 %v3120_v21  ;;  %2247 = vmatprep.subr.bf16.mxu1 %v3122_v22 }
  0x52   :  { %2217 = vmatpush1.bf16.msra.mxu0 %v3126_v25  ;;  %2249 = vmatpush1.bf16.msra.mxu1 %v3128_v28 }
  0x53   :  { %2219 = vmatprep.subr.bf16.mxu0 %v3139_v38  ;;  %2251 = vmatprep.subr.bf16.mxu1 %v3141_v39 }
  0x56   :  { %2221 = vmatpush1.bf16.msra.mxu0 %v3145_v44  ;;  %2253 = vmatpush1.bf16.msra.mxu1 %v3147_v47 }
  0x57   :  { %2223 = vmatprep.subr.bf16.mxu0 %v3158_v57  ;;  %2255 = vmatprep.subr.bf16.mxu1 %v3160_v60 }
  0x5a   :  { %2225 = vmatpush1.bf16.msra.mxu0 %v3164_v61  ;;  %2257 = vmatpush1.bf16.msra.mxu1 %v3166_v62 }
  0x5b   :  { %2259 = vmatprep.subr.bf16.mxu0 %v3025_v10  ;;  %2291 = vmatprep.subr.bf16.mxu1 %v3029_v14 }
 0x110   :  { %v505_v12 = vpop.f32.mrb[0].mxu0  ;;  %v576_v13 = vpop.f32.mrb[0].mxu1 }
 0x111   :  { %v2642_v17 = vadd.f32 %v505_v12, %v3224_v7  ;;  %v507_v19 = vpop.f32.mrb[1].mxu0  ;;  %v578_v20 = vpop.f32.mrb[1].mxu1  ;;  %v2658_v37 = vadd.f32 %v576_v13, %v3235_v35 }
 0x112   :  { %v2643_v23 = vadd.f32 %v507_v19, %v3226_v11  ;;  %v2659_v34 = vadd.f32 %v578_v20, %v3231_v32 }
 0x113   :  { %v2096_v24 = vmul.f32 -1.442695, %v2642_v17 }
 0x114   :  { %v2097_v29 = vmul.f32 -1.442695, %v2643_v23  ;;  %v2098_v36 = vmul.f32 -1.442695, %v2659_v34 }
 0x115   :  { %2718 = vpow2.f32 %v2096_v24 }
 0x116   :  { %2720 = vpow2.f32 %v2097_v29 }
 0x117   :  { %2722 = vpow2.f32 %v2098_v36 }
 0x118   :  { %2724 = vtanh.f32 %v2658_v37 }
 0x11f   :  { %v2719_v40 = vpop.eup %2718 }
 0x120   :  { %v2721_v43 = vpop.eup %2720  ;;  %v588_v48 = vadd.f32 1.0, %v2719_v40 }
 0x121   :  { %v594_v49 = vadd.f32 1.0, %v2721_v43  ;;  %v2723_v50 = vpop.eup %2722 }
 0x122   :  { %2726 = vrcp.f32 %v588_v48  ;;  %v2725_v51 = vpop.eup %2724  ;;  %v601_v2 = vadd.f32 1.0, %v2723_v50 }
 0x123   :  { %2728 = vrcp.f32 %v594_v49 }
 0x124   :  { %2730 = vrcp.f32 %v601_v2 }
 0x12c   :  { %v2727_v52 = vpop.eup %2726 }
 0x12d   :  { %v2729_v53 = vpop.eup %2728  ;;  %v605_v56 = vmul.f32 %v2727_v52, %v2725_v51 }
 0x12e   :  { %v604_v6 = vmul.f32 0.0, %v2729_v53  ;;  %v2731_v12 = vpop.eup %2730 }
 0x130   :  { %v3238_v3 = vadd.f32 %v605_v56, %v604_v6 }
 0x132   :  { %2732 = vtanh.f32 %v3238_v3 }
 0x13c   :  { %v2733_v13 = vpop.eup %2732 }
 0x13d   :  { %v608_v17 = vmul.f32 %v2733_v13, %v2731_v12 }
 0x13f   :  { %609 = vst [vmem:[#allocation7] sm:$0xff] %v608_v17  ;;  %680 = vmatmul.mubr.f32.vlgmr.msra.gmra.mrb[2].mxu0 %v608_v17  ;;  %751 = vmatmul.mubr.f32.vlgmr.msra.gmra.mrb[2].mxu1 %v608_v17  ;;  %v1864_v19 = vmul.f32 %v3244_v16, %v608_v17 }
 0x140   :  { %2261 = vmatpush1.bf16.msra.mxu0 %v3031_v15  ;;  %2293 = vmatpush1.bf16.msra.mxu1 %v3035_v18 }
 0x141   :  { %1872 = vadd.xlane.f32.xlu0 %v1864_v19  ;;  %2263 = vmatprep.subr.bf16.mxu0 %v3044_v26 }
 0x142   :  { %2295 = vmatprep.subr.bf16.mxu1 %v3046_v27  ;;  %856 = vmatprep.mubr.f32.mxu0 %v2953_v1 }
 0x143   :  { %927 = vmatprep.mubr.f32.mxu1 %v2953_v1 }
 0x144   :  { %2265 = vmatpush1.bf16.msra.mxu0 %v3050_v30  ;;  %2297 = vmatpush1.bf16.msra.mxu1 %v3052_v31 }
 0x145   :  { %2267 = vmatprep.subr.bf16.mxu0 %v3063_v41  ;;  %2299 = vmatprep.subr.bf16.mxu1 %v3065_v42 }
 0x148   :  { %2269 = vmatpush1.bf16.msra.mxu0 %v3069_v45  ;;  %2301 = vmatpush1.bf16.msra.mxu1 %v3071_v46 }
 0x149   :  { %2271 = vmatprep.subr.bf16.mxu0 %v3082_v54  ;;  %2303 = vmatprep.subr.bf16.mxu1 %v3084_v55 }
 0x14c   :  { %2273 = vmatpush1.bf16.msra.mxu0 %v3088_v58  ;;  %2305 = vmatpush1.bf16.msra.mxu1 %v3090_v59 }
 0x14d   :  { %2275 = vmatprep.subr.bf16.mxu0 %v3101_v4  ;;  %2307 = vmatprep.subr.bf16.mxu1 %v3103_v5 }
 0x150   :  { %2277 = vmatpush1.bf16.msra.mxu0 %v3107_v8  ;;  %2309 = vmatpush1.bf16.msra.mxu1 %v3109_v9 }
 0x151   :  { %2279 = vmatprep.subr.bf16.mxu0 %v3120_v21  ;;  %2311 = vmatprep.subr.bf16.mxu1 %v3122_v22 }
 0x154   :  { %2281 = vmatpush1.bf16.msra.mxu0 %v3126_v25  ;;  %2313 = vmatpush1.bf16.msra.mxu1 %v3128_v28 }
 0x155   :  { %2283 = vmatprep.subr.bf16.mxu0 %v3139_v38  ;;  %2315 = vmatprep.subr.bf16.mxu1 %v3141_v39 }
 0x158   :  { %2285 = vmatpush1.bf16.msra.mxu0 %v3145_v44  ;;  %2317 = vmatpush1.bf16.msra.mxu1 %v3147_v47 }
 0x159   :  { %2287 = vmatprep.subr.bf16.mxu0 %v3158_v57  ;;  %2319 = vmatprep.subr.bf16.mxu1 %v3160_v60 }
 0x15c   :  { %2289 = vmatpush1.bf16.msra.mxu0 %v3164_v61  ;;  %2321 = vmatpush1.bf16.msra.mxu1 %v3166_v62 }
 0x15d   :  { %2323 = vmatprep.subr.bf16.mxu0 %v3025_v10  ;;  %2355 = vmatprep.subr.bf16.mxu1 %v3029_v14 }
 0x212   :  { %v681_v20 = vpop.f32.mrb[2].mxu0  ;;  %v752_v23 = vpop.f32.mrb[2].mxu1 }
 0x213   :  { %v2644_v24 = vadd.f32 %v681_v20, %v3224_v7  ;;  %v683_v29 = vpop.f32.mrb[3].mxu0  ;;  %v754_v33 = vpop.f32.mrb[3].mxu1  ;;  %v2660_v48 = vadd.f32 %v752_v23, %v3235_v35 }
 0x214   :  { %v2645_v34 = vadd.f32 %v683_v29, %v3226_v11  ;;  %v2661_v40 = vadd.f32 %v754_v33, %v3231_v32 }
 0x215   :  { %v2099_v36 = vmul.f32 -1.442695, %v2644_v24 }
 0x216   :  { %v2100_v37 = vmul.f32 -1.442695, %v2645_v34  ;;  %v2101_v43 = vmul.f32 -1.442695, %v2661_v40 }
 0x217   :  { %2734 = vpow2.f32 %v2099_v36 }
 0x218   :  { %2736 = vpow2.f32 %v2100_v37 }
 0x219   :  { %2738 = vpow2.f32 %v2101_v43 }
 0x21a   :  { %2740 = vtanh.f32 %v2660_v48 }
 0x221   :  { %v2735_v49 = vpop.eup %2734 }
 0x222   :  { %v2737_v50 = vpop.eup %2736  ;;  %v764_v51 = vadd.f32 1.0, %v2735_v49 }
 0x223   :  { %v770_v52 = vadd.f32 1.0, %v2737_v50  ;;  %v2739_v53 = vpop.eup %2738 }
 0x224   :  { %2742 = vrcp.f32 %v764_v51  ;;  %v2741_v56 = vpop.eup %2740  ;;  %v777_v13 = vadd.f32 1.0, %v2739_v53 }
 0x225   :  { %2744 = vrcp.f32 %v770_v52 }
 0x226   :  { %2746 = vrcp.f32 %v777_v13 }
 0x22e   :  { %v2743_v2 = vpop.eup %2742 }
 0x22f   :  { %v2745_v6 = vpop.eup %2744  ;;  %v781_v12 = vmul.f32 %v2743_v2, %v2741_v56 }
 0x230   :  { %v780_v17 = vmul.f32 %v2745_v6, %v3238_v3  ;;  %v2747_v20 = vpop.eup %2746 }
 0x232   :  { %v3286_v19 = vadd.f32 %v781_v12, %v780_v17 }
 0x234   :  { %2748 = vtanh.f32 %v3286_v19 }
 0x23e   :  { %v2749_v23 = vpop.eup %2748 }
 0x23f   :  { %v784_v24 = vmul.f32 %v2749_v23, %v2747_v20 }
 0x241   :  { %786 = vst [vmem:[#allocation7 + $0x8] sm:$0xff] %v784_v24  ;;  %857 = vmatmul.mubr.f32.vlgmr.msra.gmra.mrb[4].mxu0 %v784_v24  ;;  %928 = vmatmul.mubr.f32.vlgmr.msra.gmra.mrb[4].mxu1 %v784_v24  ;;  %v1865_v29 = vmul.f32 %v3244_v16, %v784_v24 }
 0x242   :  { %2325 = vmatpush1.bf16.msra.mxu0 %v3031_v15  ;;  %2357 = vmatpush1.bf16.msra.mxu1 %v3035_v18 }
 0x243   :  { %1874 = vadd.xlane.f32.xlu0 %v1865_v29  ;;  %2327 = vmatprep.subr.bf16.mxu0 %v3044_v26 }
 0x244   :  { %2359 = vmatprep.subr.bf16.mxu1 %v3046_v27  ;;  %1033 = vmatprep.mubr.f32.mxu0 %v2953_v1 }
 0x245   :  { %1104 = vmatprep.mubr.f32.mxu1 %v2953_v1 }
 0x246   :  { %2329 = vmatpush1.bf16.msra.mxu0 %v3050_v30  ;;  %2361 = vmatpush1.bf16.msra.mxu1 %v3052_v31 }
 0x247   :  { %2331 = vmatprep.subr.bf16.mxu0 %v3063_v41  ;;  %2363 = vmatprep.subr.bf16.mxu1 %v3065_v42 }
 0x24a   :  { %2333 = vmatpush1.bf16.msra.mxu0 %v3069_v45  ;;  %2365 = vmatpush1.bf16.msra.mxu1 %v3071_v46 }
 0x24b   :  { %2335 = vmatprep.subr.bf16.mxu0 %v3082_v54  ;;  %2367 = vmatprep.subr.bf16.mxu1 %v3084_v55 }
 0x24e   :  { %2337 = vmatpush1.bf16.msra.mxu0 %v3088_v58  ;;  %2369 = vmatpush1.bf16.msra.mxu1 %v3090_v59 }
 0x24f   :  { %2339 = vmatprep.subr.bf16.mxu0 %v3101_v4  ;;  %2371 = vmatprep.subr.bf16.mxu1 %v3103_v5 }
 0x252   :  { %2341 = vmatpush1.bf16.msra.mxu0 %v3107_v8  ;;  %2373 = vmatpush1.bf16.msra.mxu1 %v3109_v9 }
 0x253   :  { %2343 = vmatprep.subr.bf16.mxu0 %v3120_v21  ;;  %2375 = vmatprep.subr.bf16.mxu1 %v3122_v22 }
 0x256   :  { %2345 = vmatpush1.bf16.msra.mxu0 %v3126_v25  ;;  %2377 = vmatpush1.bf16.msra.mxu1 %v3128_v28 }
 0x257   :  { %2347 = vmatprep.subr.bf16.mxu0 %v3139_v38  ;;  %2379 = vmatprep.subr.bf16.mxu1 %v3141_v39 }
 0x25a   :  { %2349 = vmatpush1.bf16.msra.mxu0 %v3145_v44  ;;  %2381 = vmatpush1.bf16.msra.mxu1 %v3147_v47 }
 0x25b   :  { %2351 = vmatprep.subr.bf16.mxu0 %v3158_v57  ;;  %2383 = vmatprep.subr.bf16.mxu1 %v3160_v60 }
 0x25e   :  { %2353 = vmatpush1.bf16.msra.mxu0 %v3164_v61  ;;  %2385 = vmatpush1.bf16.msra.mxu1 %v3166_v62 }
 0x25f   :  { %2387 = vmatprep.subr.bf16.mxu0 %v3025_v10  ;;  %2419 = vmatprep.subr.bf16.mxu1 %v3029_v14 }
 0x314   :  { %v858_v3 = vpop.f32.mrb[4].mxu0  ;;  %v929_v33 = vpop.f32.mrb[4].mxu1 }
 0x315   :  { %v2646_v34 = vadd.f32 %v858_v3, %v3224_v7  ;;  %v860_v36 = vpop.f32.mrb[5].mxu0  ;;  %v931_v37 = vpop.f32.mrb[5].mxu1  ;;  %v2662_v51 = vadd.f32 %v929_v33, %v3235_v35 }
 0x316   :  { %v2647_v40 = vadd.f32 %v860_v36, %v3226_v11  ;;  %v2663_v49 = vadd.f32 %v931_v37, %v3231_v32 }
 0x317   :  { %v2102_v43 = vmul.f32 -1.442695, %v2646_v34 }
 0x318   :  { %v2103_v48 = vmul.f32 -1.442695, %v2647_v40  ;;  %v2104_v50 = vmul.f32 -1.442695, %v2663_v49 }
 0x319   :  { %2750 = vpow2.f32 %v2102_v43 }
 0x31a   :  { %2752 = vpow2.f32 %v2103_v48 }
 0x31b   :  { %2754 = vpow2.f32 %v2104_v50 }
 0x31c   :  { %2756 = vtanh.f32 %v2662_v51 }
 0x323   :  { %v2751_v52 = vpop.eup %2750 }
 0x324   :  { %v2753_v53 = vpop.eup %2752  ;;  %v941_v56 = vadd.f32 1.0, %v2751_v52 }
 0x325   :  { %v947_v2 = vadd.f32 1.0, %v2753_v53  ;;  %v2755_v6 = vpop.eup %2754 }
 0x326   :  { %2758 = vrcp.f32 %v941_v56  ;;  %v2757_v12 = vpop.eup %2756  ;;  %v954_v23 = vadd.f32 1.0, %v2755_v6 }
 0x327   :  { %2760 = vrcp.f32 %v947_v2 }
 0x328   :  { %2762 = vrcp.f32 %v954_v23 }
 0x330   :  { %v2759_v13 = vpop.eup %2758 }
 0x331   :  { %v2761_v17 = vpop.eup %2760  ;;  %v958_v20 = vmul.f32 %v2759_v13, %v2757_v12 }
 0x332   :  { %v957_v24 = vmul.f32 %v2761_v17, %v3286_v19  ;;  %v2763_v3 = vpop.eup %2762 }
 0x334   :  { %v3329_v29 = vadd.f32 %v958_v20, %v957_v24 }
 0x336   :  { %2764 = vtanh.f32 %v3329_v29 }
 0x340   :  { %v2765_v33 = vpop.eup %2764 }
 0x341   :  { %v961_v34 = vmul.f32 %v2765_v33, %v2763_v3 }
 0x343   :  { %963 = vst [vmem:[#allocation7 + $0x10] sm:$0xff] %v961_v34  ;;  %1034 = vmatmul.mubr.f32.vlgmr.msra.gmra.mrb[6].mxu0 %v961_v34  ;;  %1105 = vmatmul.mubr.f32.vlgmr.msra.gmra.mrb[6].mxu1 %v961_v34  ;;  %v1866_v36 = vmul.f32 %v3244_v16, %v961_v34 }
 0x344   :  { %2389 = vmatpush1.bf16.msra.mxu0 %v3031_v15  ;;  %2421 = vmatpush1.bf16.msra.mxu1 %v3035_v18 }
 0x345   :  { %1876 = vadd.xlane.f32.xlu1 %v1866_v36  ;;  %2391 = vmatprep.subr.bf16.mxu0 %v3044_v26 }
 0x346   :  { %2423 = vmatprep.subr.bf16.mxu1 %v3046_v27  ;;  %1210 = vmatprep.mubr.f32.mxu0 %v2953_v1 }
 0x347   :  { %1281 = vmatprep.mubr.f32.mxu1 %v2953_v1 }
 0x348   :  { %2393 = vmatpush1.bf16.msra.mxu0 %v3050_v30  ;;  %2425 = vmatpush1.bf16.msra.mxu1 %v3052_v31 }
 0x349   :  { %2395 = vmatprep.subr.bf16.mxu0 %v3063_v41  ;;  %2427 = vmatprep.subr.bf16.mxu1 %v3065_v42 }
 0x34c   :  { %2397 = vmatpush1.bf16.msra.mxu0 %v3069_v45  ;;  %2429 = vmatpush1.bf16.msra.mxu1 %v3071_v46 }
 0x34d   :  { %2399 = vmatprep.subr.bf16.mxu0 %v3082_v54  ;;  %2431 = vmatprep.subr.bf16.mxu1 %v3084_v55 }
 0x350   :  { %2401 = vmatpush1.bf16.msra.mxu0 %v3088_v58  ;;  %2433 = vmatpush1.bf16.msra.mxu1 %v3090_v59 }
 0x351   :  { %2403 = vmatprep.subr.bf16.mxu0 %v3101_v4  ;;  %2435 = vmatprep.subr.bf16.mxu1 %v3103_v5 }
 0x354   :  { %2405 = vmatpush1.bf16.msra.mxu0 %v3107_v8  ;;  %2437 = vmatpush1.bf16.msra.mxu1 %v3109_v9 }
 0x355   :  { %2407 = vmatprep.subr.bf16.mxu0 %v3120_v21  ;;  %2439 = vmatprep.subr.bf16.mxu1 %v3122_v22 }
 0x358   :  { %2409 = vmatpush1.bf16.msra.mxu0 %v3126_v25  ;;  %2441 = vmatpush1.bf16.msra.mxu1 %v3128_v28 }
 0x359   :  { %2411 = vmatprep.subr.bf16.mxu0 %v3139_v38  ;;  %2443 = vmatprep.subr.bf16.mxu1 %v3141_v39 }
 0x35c   :  { %2413 = vmatpush1.bf16.msra.mxu0 %v3145_v44  ;;  %2445 = vmatpush1.bf16.msra.mxu1 %v3147_v47 }
 0x35d   :  { %2415 = vmatprep.subr.bf16.mxu0 %v3158_v57  ;;  %2447 = vmatprep.subr.bf16.mxu1 %v3160_v60 }
 0x360   :  { %2417 = vmatpush1.bf16.msra.mxu0 %v3164_v61  ;;  %2449 = vmatpush1.bf16.msra.mxu1 %v3166_v62 }
 0x361   :  { %2451 = vmatprep.subr.bf16.mxu0 %v3025_v10  ;;  %2483 = vmatprep.subr.bf16.mxu1 %v3029_v14 }
 0x416   :  { %v1035_v19 = vpop.f32.mrb[6].mxu0  ;;  %v1106_v37 = vpop.f32.mrb[6].mxu1 }
 0x417   :  { %v2648_v40 = vadd.f32 %v1035_v19, %v3224_v7  ;;  %v1037_v43 = vpop.f32.mrb[7].mxu0  ;;  %v1108_v48 = vpop.f32.mrb[7].mxu1  ;;  %v2664_v56 = vadd.f32 %v1106_v37, %v3235_v35 }
 0x418   :  { %v2649_v49 = vadd.f32 %v1037_v43, %v3226_v11  ;;  %v2665_v52 = vadd.f32 %v1108_v48, %v3231_v32 }
 0x419   :  { %v2105_v50 = vmul.f32 -1.442695, %v2648_v40 }
 0x41a   :  { %v2106_v51 = vmul.f32 -1.442695, %v2649_v49  ;;  %v2107_v53 = vmul.f32 -1.442695, %v2665_v52 }
 0x41b   :  { %2766 = vpow2.f32 %v2105_v50 }
 0x41c   :  { %2768 = vpow2.f32 %v2106_v51 }
 0x41d   :  { %2770 = vpow2.f32 %v2107_v53 }
 0x41e   :  { %2772 = vtanh.f32 %v2664_v56 }
 0x425   :  { %v2767_v2 = vpop.eup %2766 }
 0x426   :  { %v2769_v6 = vpop.eup %2768  ;;  %v1118_v12 = vadd.f32 1.0, %v2767_v2 }
 0x427   :  { %v1124_v13 = vadd.f32 1.0, %v2769_v6  ;;  %v2771_v17 = vpop.eup %2770 }
 0x428   :  { %2774 = vrcp.f32 %v1118_v12  ;;  %v2773_v20 = vpop.eup %2772  ;;  %v1131_v33 = vadd.f32 1.0, %v2771_v17 }
 0x429   :  { %2776 = vrcp.f32 %v1124_v13 }
 0x42a   :  { %2778 = vrcp.f32 %v1131_v33 }
 0x432   :  { %v2775_v23 = vpop.eup %2774 }
 0x433   :  { %v2777_v24 = vpop.eup %2776  ;;  %v1135_v3 = vmul.f32 %v2775_v23, %v2773_v20 }
 0x434   :  { %v1134_v34 = vmul.f32 %v2777_v24, %v3329_v29  ;;  %v2779_v19 = vpop.eup %2778 }
 0x436   :  { %v3372_v36 = vadd.f32 %v1135_v3, %v1134_v34 }
 0x438   :  { %2780 = vtanh.f32 %v3372_v36 }
 0x442   :  { %v2781_v37 = vpop.eup %2780 }
 0x443   :  { %v1138_v40 = vmul.f32 %v2781_v37, %v2779_v19 }
 0x445   :  { %1140 = vst [vmem:[#allocation7 + $0x18] sm:$0xff] %v1138_v40  ;;  %1211 = vmatmul.mubr.f32.vlgmr.msra.gmra.mrb[8].mxu0 %v1138_v40  ;;  %1282 = vmatmul.mubr.f32.vlgmr.msra.gmra.mrb[8].mxu1 %v1138_v40  ;;  %v1867_v43 = vmul.f32 %v3244_v16, %v1138_v40 }
 0x446   :  { %2453 = vmatpush1.bf16.msra.mxu0 %v3031_v15  ;;  %2485 = vmatpush1.bf16.msra.mxu1 %v3035_v18 }
 0x447   :  { %1878 = vadd.xlane.f32.xlu1 %v1867_v43  ;;  %2455 = vmatprep.subr.bf16.mxu0 %v3044_v26 }
 0x448   :  { %2487 = vmatprep.subr.bf16.mxu1 %v3046_v27  ;;  %1387 = vmatprep.mubr.f32.mxu0 %v2953_v1 }
 0x449   :  { %1458 = vmatprep.mubr.f32.mxu1 %v2953_v1 }
 0x44a   :  { %2457 = vmatpush1.bf16.msra.mxu0 %v3050_v30  ;;  %2489 = vmatpush1.bf16.msra.mxu1 %v3052_v31 }
 0x44b   :  { %2459 = vmatprep.subr.bf16.mxu0 %v3063_v41  ;;  %2491 = vmatprep.subr.bf16.mxu1 %v3065_v42 }
 0x44e   :  { %2461 = vmatpush1.bf16.msra.mxu0 %v3069_v45  ;;  %2493 = vmatpush1.bf16.msra.mxu1 %v3071_v46 }
 0x44f   :  { %2463 = vmatprep.subr.bf16.mxu0 %v3082_v54  ;;  %2495 = vmatprep.subr.bf16.mxu1 %v3084_v55 }
 0x452   :  { %2465 = vmatpush1.bf16.msra.mxu0 %v3088_v58  ;;  %2497 = vmatpush1.bf16.msra.mxu1 %v3090_v59 }
 0x453   :  { %2467 = vmatprep.subr.bf16.mxu0 %v3101_v4  ;;  %2499 = vmatprep.subr.bf16.mxu1 %v3103_v5 }
 0x456   :  { %2469 = vmatpush1.bf16.msra.mxu0 %v3107_v8  ;;  %2501 = vmatpush1.bf16.msra.mxu1 %v3109_v9 }
 0x457   :  { %2471 = vmatprep.subr.bf16.mxu0 %v3120_v21  ;;  %2503 = vmatprep.subr.bf16.mxu1 %v3122_v22 }
 0x45a   :  { %2473 = vmatpush1.bf16.msra.mxu0 %v3126_v25  ;;  %2505 = vmatpush1.bf16.msra.mxu1 %v3128_v28 }
 0x45b   :  { %2475 = vmatprep.subr.bf16.mxu0 %v3139_v38  ;;  %2507 = vmatprep.subr.bf16.mxu1 %v3141_v39 }
 0x45e   :  { %2477 = vmatpush1.bf16.msra.mxu0 %v3145_v44  ;;  %2509 = vmatpush1.bf16.msra.mxu1 %v3147_v47 }
 0x45f   :  { %2479 = vmatprep.subr.bf16.mxu0 %v3158_v57  ;;  %2511 = vmatprep.subr.bf16.mxu1 %v3160_v60 }
 0x462   :  { %2481 = vmatpush1.bf16.msra.mxu0 %v3164_v61  ;;  %2513 = vmatpush1.bf16.msra.mxu1 %v3166_v62 }
 0x463   :  { %2515 = vmatprep.subr.bf16.mxu0 %v3025_v10  ;;  %2547 = vmatprep.subr.bf16.mxu1 %v3029_v14 }
 0x518   :  { %v1212_v29 = vpop.f32.mrb[8].mxu0  ;;  %v1283_v48 = vpop.f32.mrb[8].mxu1 }
 0x519   :  { %v2650_v49 = vadd.f32 %v1212_v29, %v3224_v7  ;;  %v1214_v50 = vpop.f32.mrb[9].mxu0  ;;  %v1285_v51 = vpop.f32.mrb[9].mxu1  ;;  %v2666_v12 = vadd.f32 %v1283_v48, %v3235_v35 }
 0x51a   :  { %v2651_v52 = vadd.f32 %v1214_v50, %v3226_v11  ;;  %v2667_v2 = vadd.f32 %v1285_v51, %v3231_v32 }
 0x51b   :  { %v2108_v53 = vmul.f32 -1.442695, %v2650_v49 }
 0x51c   :  { %v2109_v56 = vmul.f32 -1.442695, %v2651_v52  ;;  %v2110_v6 = vmul.f32 -1.442695, %v2667_v2 }
 0x51d   :  { %2782 = vpow2.f32 %v2108_v53 }
 0x51e   :  { %2784 = vpow2.f32 %v2109_v56 }
 0x51f   :  { %2786 = vpow2.f32 %v2110_v6 }
 0x520   :  { %2788 = vtanh.f32 %v2666_v12 }
 0x527   :  { %v2783_v13 = vpop.eup %2782 }
 0x528   :  { %v2785_v17 = vpop.eup %2784  ;;  %v1295_v20 = vadd.f32 1.0, %v2783_v13 }
 0x529   :  { %v1301_v23 = vadd.f32 1.0, %v2785_v17  ;;  %v2787_v24 = vpop.eup %2786 }
 0x52a   :  { %2790 = vrcp.f32 %v1295_v20  ;;  %v2789_v3 = vpop.eup %2788  ;;  %v1308_v37 = vadd.f32 1.0, %v2787_v24 }
 0x52b   :  { %2792 = vrcp.f32 %v1301_v23 }
 0x52c   :  { %2794 = vrcp.f32 %v1308_v37 }
 0x534   :  { %v2791_v33 = vpop.eup %2790 }
 0x535   :  { %v2793_v34 = vpop.eup %2792  ;;  %v1312_v19 = vmul.f32 %v2791_v33, %v2789_v3 }
 0x536   :  { %v1311_v40 = vmul.f32 %v2793_v34, %v3372_v36  ;;  %v2795_v29 = vpop.eup %2794 }
 0x538   :  { %v3415_v43 = vadd.f32 %v1312_v19, %v1311_v40 }
 0x53a   :  { %2796 = vtanh.f32 %v3415_v43 }
 0x544   :  { %v2797_v48 = vpop.eup %2796 }
 0x545   :  { %v1315_v49 = vmul.f32 %v2797_v48, %v2795_v29 }
 0x547   :  { %1317 = vst [vmem:[#allocation7 + $0x20] sm:$0xff] %v1315_v49  ;;  %1388 = vmatmul.mubr.f32.vlgmr.msra.gmra.mrb[10].mxu0 %v1315_v49  ;;  %1459 = vmatmul.mubr.f32.vlgmr.msra.gmra.mrb[10].mxu1 %v1315_v49  ;;  %v1868_v50 = vmul.f32 %v3244_v16, %v1315_v49 }
 0x548   :  { %2517 = vmatpush1.bf16.msra.mxu0 %v3031_v15  ;;  %2549 = vmatpush1.bf16.msra.mxu1 %v3035_v18 }
 0x549   :  { %1880 = vadd.xlane.f32.xlu0 %v1868_v50  ;;  %2519 = vmatprep.subr.bf16.mxu0 %v3044_v26 }
 0x54a   :  { %2551 = vmatprep.subr.bf16.mxu1 %v3046_v27  ;;  %1564 = vmatprep.mubr.f32.mxu0 %v2953_v1 }
 0x54b   :  { %1635 = vmatprep.mubr.f32.mxu1 %v2953_v1 }
 0x54c   :  { %2521 = vmatpush1.bf16.msra.mxu0 %v3050_v30  ;;  %2553 = vmatpush1.bf16.msra.mxu1 %v3052_v31 }
 0x54d   :  { %2523 = vmatprep.subr.bf16.mxu0 %v3063_v41  ;;  %2555 = vmatprep.subr.bf16.mxu1 %v3065_v42 }
 0x550   :  { %2525 = vmatpush1.bf16.msra.mxu0 %v3069_v45  ;;  %2557 = vmatpush1.bf16.msra.mxu1 %v3071_v46 }
 0x551   :  { %2527 = vmatprep.subr.bf16.mxu0 %v3082_v54  ;;  %2559 = vmatprep.subr.bf16.mxu1 %v3084_v55 }
 0x554   :  { %2529 = vmatpush1.bf16.msra.mxu0 %v3088_v58  ;;  %2561 = vmatpush1.bf16.msra.mxu1 %v3090_v59 }
 0x555   :  { %2531 = vmatprep.subr.bf16.mxu0 %v3101_v4  ;;  %2563 = vmatprep.subr.bf16.mxu1 %v3103_v5 }
 0x558   :  { %2533 = vmatpush1.bf16.msra.mxu0 %v3107_v8  ;;  %2565 = vmatpush1.bf16.msra.mxu1 %v3109_v9 }
 0x559   :  { %2535 = vmatprep.subr.bf16.mxu0 %v3120_v21  ;;  %2567 = vmatprep.subr.bf16.mxu1 %v3122_v22 }
 0x55c   :  { %2537 = vmatpush1.bf16.msra.mxu0 %v3126_v25  ;;  %2569 = vmatpush1.bf16.msra.mxu1 %v3128_v28 }
 0x55d   :  { %2539 = vmatprep.subr.bf16.mxu0 %v3139_v38  ;;  %2571 = vmatprep.subr.bf16.mxu1 %v3141_v39 }
 0x560   :  { %2541 = vmatpush1.bf16.msra.mxu0 %v3145_v44  ;;  %2573 = vmatpush1.bf16.msra.mxu1 %v3147_v47 }
 0x561   :  { %2543 = vmatprep.subr.bf16.mxu0 %v3158_v57  ;;  %2575 = vmatprep.subr.bf16.mxu1 %v3160_v60 }
 0x564   :  { %2545 = vmatpush1.bf16.msra.mxu0 %v3164_v61  ;;  %2577 = vmatpush1.bf16.msra.mxu1 %v3166_v62 }
 0x565   :  { %2579 = vmatprep.subr.bf16.mxu0 %v3025_v10  ;;  %2611 = vmatprep.subr.bf16.mxu1 %v3029_v14 }
 0x61a   :  { %v1389_v36 = vpop.f32.mrb[10].mxu0  ;;  %v1460_v51 = vpop.f32.mrb[10].mxu1 }
 0x61b   :  { %v2652_v52 = vadd.f32 %v1389_v36, %v3224_v7  ;;  %v1391_v53 = vpop.f32.mrb[11].mxu0  ;;  %v1462_v56 = vpop.f32.mrb[11].mxu1  ;;  %v2668_v20 = vadd.f32 %v1460_v51, %v3235_v35 }
 0x61c   :  { %v2653_v2 = vadd.f32 %v1391_v53, %v3226_v11  ;;  %v2669_v13 = vadd.f32 %v1462_v56, %v3231_v32 }
 0x61d   :  { %v2111_v6 = vmul.f32 -1.442695, %v2652_v52 }
 0x61e   :  { %v2112_v12 = vmul.f32 -1.442695, %v2653_v2  ;;  %v2113_v17 = vmul.f32 -1.442695, %v2669_v13 }
 0x61f   :  { %2798 = vpow2.f32 %v2111_v6 }
 0x620   :  { %2800 = vpow2.f32 %v2112_v12 }
 0x621   :  { %2802 = vpow2.f32 %v2113_v17 }
 0x622   :  { %2804 = vtanh.f32 %v2668_v20 }
 0x629   :  { %v2799_v10 = vpop.eup %2798 }
 0x62a   :  { %v2801_v23 = vpop.eup %2800  ;;  %v1472_v14 = vadd.f32 1.0, %v2799_v10 }
 0x62b   :  { %v1478_v24 = vadd.f32 1.0, %v2801_v23  ;;  %v2803_v3 = vpop.eup %2802 }
 0x62c   :  { %2806 = vrcp.f32 %v1472_v14  ;;  %v2805_v33 = vpop.eup %2804  ;;  %v1485_v40 = vadd.f32 1.0, %v2803_v3 }
 0x62d   :  { %2808 = vrcp.f32 %v1478_v24 }
 0x62e   :  { %2810 = vrcp.f32 %v1485_v40 }
 0x636   :  { %v2807_v34 = vpop.eup %2806 }
 0x637   :  { %v2809_v19 = vpop.eup %2808  ;;  %v1489_v37 = vmul.f32 %v2807_v34, %v2805_v33 }
 0x638   :  { %v1488_v29 = vmul.f32 %v2809_v19, %v3415_v43  ;;  %v2811_v49 = vpop.eup %2810 }
 0x63a   :  { %v3458_v48 = vadd.f32 %v1489_v37, %v1488_v29 }
 0x63c   :  { %2812 = vtanh.f32 %v3458_v48 }
 0x646   :  { %v2813_v50 = vpop.eup %2812 }
 0x647   :  { %v1492_v36 = vmul.f32 %v2813_v50, %v2811_v49 }
 0x649   :  { %1494 = vst [vmem:[#allocation7 + $0x28] sm:$0xff] %v1492_v36  ;;  %1565 = vmatmul.mubr.f32.vlgmr.msra.gmra.mrb[12].mxu0 %v1492_v36  ;;  %1636 = vmatmul.mubr.f32.vlgmr.msra.gmra.mrb[12].mxu1 %v1492_v36  ;;  %v1869_v51 = vmul.f32 %v3244_v16, %v1492_v36 }
 0x64a   :  { %2581 = vmatpush1.bf16.msra.mxu0 %v3031_v15  ;;  %2613 = vmatpush1.bf16.msra.mxu1 %v3035_v18 }
 0x64b   :  { %1882 = vadd.xlane.f32.xlu1 %v1869_v51  ;;  %2583 = vmatprep.subr.bf16.mxu0 %v3044_v26 }
 0x64c   :  { %2615 = vmatprep.subr.bf16.mxu1 %v3046_v27  ;;  %1741 = vmatprep.mubr.f32.mxu0 %v2953_v1 }
 0x64d   :  { %1812 = vmatprep.mubr.f32.mxu1 %v2953_v1  ;;  %v2954_v1 = vmov 0  }
 0x64e   :  { %2585 = vmatpush1.bf16.msra.mxu0 %v3050_v30  ;;  %2617 = vmatpush1.bf16.msra.mxu1 %v3052_v31 }
 0x64f   :  { %2587 = vmatprep.subr.bf16.mxu0 %v3063_v41  ;;  %2619 = vmatprep.subr.bf16.mxu1 %v3065_v42 }
 0x650   :  { %2715 = vset.pattern.permute.xlu0 %v2954_v1 }
 0x652   :  { %2589 = vmatpush1.bf16.msra.mxu0 %v3069_v45  ;;  %2621 = vmatpush1.bf16.msra.mxu1 %v3071_v46 }
 0x653   :  { %2591 = vmatprep.subr.bf16.mxu0 %v3082_v54  ;;  %2623 = vmatprep.subr.bf16.mxu1 %v3084_v55 }
 0x656   :  { %2593 = vmatpush1.bf16.msra.mxu0 %v3088_v58  ;;  %2625 = vmatpush1.bf16.msra.mxu1 %v3090_v59 }
 0x657   :  { %2595 = vmatprep.subr.bf16.mxu0 %v3101_v4  ;;  %2627 = vmatprep.subr.bf16.mxu1 %v3103_v5 }
 0x65a   :  { %2597 = vmatpush1.bf16.msra.mxu0 %v3107_v8  ;;  %2629 = vmatpush1.bf16.msra.mxu1 %v3109_v9 }
 0x65b   :  { %2599 = vmatprep.subr.bf16.mxu0 %v3120_v21  ;;  %2631 = vmatprep.subr.bf16.mxu1 %v3122_v22 }
 0x65e   :  { %2601 = vmatpush1.bf16.msra.mxu0 %v3126_v25  ;;  %2633 = vmatpush1.bf16.msra.mxu1 %v3128_v28 }
 0x65f   :  { %2603 = vmatprep.subr.bf16.mxu0 %v3139_v38  ;;  %2635 = vmatprep.subr.bf16.mxu1 %v3141_v39 }
 0x662   :  { %2605 = vmatpush1.bf16.msra.mxu0 %v3145_v44  ;;  %2637 = vmatpush1.bf16.msra.mxu1 %v3147_v47 }
 0x663   :  { %2607 = vmatprep.subr.bf16.mxu0 %v3158_v57  ;;  %2639 = vmatprep.subr.bf16.mxu1 %v3160_v60  ;;  %v2121_v60 = vld [vmem:[#allocation3] ss:$0 sm:$0xff] }
 0x666   :  { %2609 = vmatpush1.bf16.msra.mxu0 %v3164_v61  ;;  %2641 = vmatpush1.bf16.msra.mxu1 %v3166_v62 }
 0x71c   :  { %v1566_v15 = vpop.f32.mrb[12].mxu0  ;;  %v1637_v18 = vpop.f32.mrb[12].mxu1 }
 0x71d   :  { %v2654_v26 = vadd.f32 %v1566_v15, %v3224_v7  ;;  %v1568_v27 = vpop.f32.mrb[13].mxu0  ;;  %v1639_v30 = vpop.f32.mrb[13].mxu1  ;;  %v2670_v54 = vadd.f32 %v1637_v18, %v3235_v35 }
 0x71e   :  { %v2655_v31 = vadd.f32 %v1568_v27, %v3226_v11  ;;  %v2671_v45 = vadd.f32 %v1639_v30, %v3231_v32  ;;  %v1877_v18 = vpop.xlane.xlu1 %1876 }
 0x71f   :  { %v2114_v41 = vmul.f32 -1.442695, %v2654_v26 }
 0x720   :  { %v2115_v42 = vmul.f32 -1.442695, %v2655_v31  ;;  %v2116_v46 = vmul.f32 -1.442695, %v2671_v45 }
 0x721   :  { %2814 = vpow2.f32 %v2114_v41 }
 0x722   :  { %2816 = vpow2.f32 %v2115_v42  ;;  %v1879_v31 = vpop.xlane.xlu1 %1878 }
 0x723   :  { %2818 = vpow2.f32 %v2116_v46 }
 0x724   :  { %2820 = vtanh.f32 %v2670_v54 }
 0x726   :  { %v1883_v46 = vpop.xlane.xlu1 %1882 }
 0x72b   :  { %v2815_v55 = vpop.eup %2814 }
 0x72c   :  { %v2817_v58 = vpop.eup %2816  ;;  %v1649_v59 = vadd.f32 1.0, %v2815_v55 }
 0x72d   :  { %v1655_v4 = vadd.f32 1.0, %v2817_v58  ;;  %v2819_v5 = vpop.eup %2818 }
 0x72e   :  { %2822 = vrcp.f32 %v1649_v59  ;;  %v2821_v8 = vpop.eup %2820  ;;  %v1662_v25 = vadd.f32 1.0, %v2819_v5 }
 0x72f   :  { %2824 = vrcp.f32 %v1655_v4 }
 0x730   :  { %2826 = vrcp.f32 %v1662_v25 }
 0x738   :  { %v2823_v9 = vpop.eup %2822 }
 0x739   :  { %v2825_v21 = vpop.eup %2824  ;;  %v1666_v22 = vmul.f32 %v2823_v9, %v2821_v8 }
 0x73a   :  { %v1665_v28 = vmul.f32 %v2825_v21, %v3458_v48  ;;  %v2827_v39 = vpop.eup %2826  ;;  %v1873_v48 = vpop.xlane.xlu0 %1872 }
 0x73c   :  { %v1667_v38 = vadd.f32 %v1666_v22, %v1665_v28 }
 0x73e   :  { %2828 = vtanh.f32 %v1667_v38  ;;  %v1875_v49 = vpop.xlane.xlu0 %1874 }
 0x742   :  { %v1881_v50 = vpop.xlane.xlu0 %1880 }
 0x748   :  { %v2829_v44 = vpop.eup %2828 }
 0x749   :  { %v1669_v47 = vmul.f32 %v2829_v44, %v2827_v39 }
 0x74b   :  { %1671 = vst [vmem:[#allocation7 + $0x30] sm:$0xff] %v1669_v47  ;;  %1742 = vmatmul.mubr.f32.vlgmr.msra.gmra.mrb[14].mxu0 %v1669_v47  ;;  %1813 = vmatmul.mubr.f32.vlgmr.msra.gmra.mrb[14].mxu1 %v1669_v47  ;;  %v1870_v57 = vmul.f32 %v3244_v16, %v1669_v47 }
 0x74d   :  { %1884 = vadd.xlane.f32.xlu0 %v1870_v57 }
 0x763   :  { %1895 = vperm.xlu0 %2715, %v2121_v60   ;;  %v1963_v60 = vand.u32 127, %v55_v63 }
 0x7da   :  { %v1885_v36 = vpop.xlane.xlu0 %1884 }
 0x7e2   :  { %v1896_v51 = vpop.permute.xlu0 %1895 }
 0x7e3   :  { %v1898_v1 = vadd.f32 %v1896_v51, %v1873_v48  ;;  %v1899_v15 = vadd.f32 %v1896_v51, %v1875_v49  ;;  %v1900_v26 = vadd.f32 %v1896_v51, %v1877_v18  ;;  %v1901_v42 = vadd.f32 %v1896_v51, %v1879_v31 }
 0x7e4   :  { %v1902_v45 = vadd.f32 %v1896_v51, %v1881_v50  ;;  %v1903_v54 = vadd.f32 %v1896_v51, %v1883_v46  ;;  %v1904_v55 = vadd.f32 %v1896_v51, %v1885_v36 }
 0x7e5   :  { %v2122_v27 = vmul.f32 -1.442695, %v1898_v1  ;;  %v2123_v30 = vmul.f32 -1.442695, %v1899_v15  ;;  %v2124_v41 = vmul.f32 -1.442695, %v1900_v26 }
 0x7e6   :  { %v2126_v58 = vmul.f32 -1.442695, %v1902_v45  ;;  %v2127_v5 = vmul.f32 -1.442695, %v1903_v54  ;;  %v2128_v8 = vmul.f32 -1.442695, %v1904_v55 }
 0x81e   :  { %v1743_v61 = vpop.f32.mrb[14].mxu0  ;;  %v1814_v62 = vpop.f32.mrb[14].mxu1 }
 0x81f   :  { %v2656_v43 = vadd.f32 %v1743_v61, %v3224_v7  ;;  %v1745_v52 = vpop.f32.mrb[15].mxu0  ;;  %v1816_v53 = vpop.f32.mrb[15].mxu1  ;;  %v2672_v17 = vadd.f32 %v1814_v62, %v3235_v35 }
 0x820   :  { %v2657_v56 = vadd.f32 %v1745_v52, %v3226_v11  ;;  %v2673_v12 = vadd.f32 %v1816_v53, %v3231_v32  ;;  %v1966_v53 = vsub.s32 %v1963_v60, %v3217_v0 }
 0x821   :  { %v2117_v2 = vmul.f32 -1.442695, %v2656_v43 }
 0x822   :  { %v2118_v6 = vmul.f32 -1.442695, %v2657_v56  ;;  %v2119_v13 = vmul.f32 -1.442695, %v2673_v12 }
 0x823   :  { %2830 = vpow2.f32 %v2117_v2 }
 0x824   :  { %2832 = vpow2.f32 %v2118_v6 }
 0x825   :  { %2834 = vpow2.f32 %v2119_v13 }
 0x826   :  { %2836 = vtanh.f32 %v2672_v17 }
 0x82d   :  { %v2831_v20 = vpop.eup %2830 }
 0x82e   :  { %v2833_v10 = vpop.eup %2832  ;;  %v1826_v23 = vadd.f32 1.0, %v2831_v20 }
 0x82f   :  { %v1832_v14 = vadd.f32 1.0, %v2833_v10  ;;  %v2835_v7 = vpop.eup %2834 }
 0x830   :  { %2838 = vrcp.f32 %v1826_v23  ;;  %v2837_v24 = vpop.eup %2836  ;;  %v1839_v34 = vadd.f32 1.0, %v2835_v7 }
 0x831   :  { %2840 = vrcp.f32 %v1832_v14 }
 0x832   :  { %2842 = vrcp.f32 %v1839_v34 }
 0x83a   :  { %v2839_v11 = vpop.eup %2838 }
 0x83b   :  { %v2841_v3 = vpop.eup %2840  ;;  %v1843_v33 = vmul.f32 %v2839_v11, %v2837_v24 }
 0x83c   :  { %v1842_v19 = vmul.f32 %v2841_v3, %v1667_v38  ;;  %v2843_v32 = vpop.eup %2842 }
 0x83e   :  { %v1844_v37 = vadd.f32 %v1843_v33, %v1842_v19 }
 0x840   :  { %2844 = vtanh.f32 %v1844_v37 }
 0x841   :  { %2846 = vpow2.f32 %v2122_v27 }
 0x842   :  { %2848 = vpow2.f32 %v2123_v30 }
 0x843   :  { %2850 = vpow2.f32 %v2124_v41 }
 0x84a   :  { %v2845_v35 = vpop.eup %2844 }
 0x84b   :  { %v1846_v40 = vmul.f32 %v2845_v35, %v2843_v32  ;;  %v2847_v59 = vpop.eup %2846 }
 0x84c   :  { %v2849_v4 = vpop.eup %2848  ;;  %v1930_v9 = vadd.f32 1.0, %v2847_v59 }
 0x84d   :  { %1848 = vst [vmem:[#allocation7 + $0x38] sm:$0xff] %v1846_v40  ;;  %v1871_v29 = vmul.f32 %v3244_v16, %v1846_v40  ;;  %v2125_v16 = vmul.f32 -1.442695, %v1901_v42  ;;  %v2851_v21 = vpop.eup %2850  ;;  %v1931_v22 = vadd.f32 1.0, %v2849_v4 }
 0x84e   :  { %v1932_v25 = vadd.f32 1.0, %v2851_v21 }
 0x84f   :  { %1886 = vadd.xlane.f32.xlu1 %v1871_v29  ;;  %2852 = vpow2.f32 %v2125_v16 }
 0x850   :  { %2854 = vpow2.f32 %v2126_v58 }
 0x851   :  { %2856 = vpow2.f32 %v2127_v5 }
 0x852   :  { %2858 = vpow2.f32 %v2128_v8 }
 0x853   :  { %2860 = vrcp.f32 %v1930_v9 }
 0x854   :  { %2862 = vrcp.f32 %v1931_v22 }
 0x855   :  { %2864 = vrcp.f32 %v1932_v25 }
 0x859   :  { %v2853_v28 = vpop.eup %2852 }
 0x85a   :  { %v2855_v44 = vpop.eup %2854  ;;  %v1933_v47 = vadd.f32 1.0, %v2853_v28 }
 0x85b   :  { %v2857_v61 = vpop.eup %2856  ;;  %v1934_v62 = vadd.f32 1.0, %v2855_v44 }
 0x85c   :  { %v2859_v43 = vpop.eup %2858  ;;  %v1935_v2 = vadd.f32 1.0, %v2857_v61 }
 0x85d   :  { %v2861_v52 = vpop.eup %2860  ;;  %v1936_v12 = vadd.f32 1.0, %v2859_v43 }
 0x85e   :  { %v2863_v56 = vpop.eup %2862  ;;  %v1967_v13 = vrot.slane %v2861_v52, %v1966_v53 }
 0x85f   :  { %v2865_v6 = vpop.eup %2864  ;;  %v1971_v17 = vrot.slane %v2863_v56, %v1966_v53 }
 0x860   :  { %v1975_v20 = vrot.slane %v2865_v6, %v1966_v53 }
 0x861   :  { %v1997_v63 = vsel %vm1996_vm2, %v1971_v17, %v1967_v13 }
 0x862   :  { %v1999_v7 = vsel %vm1998_vm3, %v1975_v20, %v1997_v63 }
 0x8dc   :  { %v1887_v38 = vpop.xlane.xlu1 %1886 }
 0x8dd   :  { %v1905_v39 = vadd.f32 %v1896_v51, %v1887_v38 }
 0x8df   :  { %v2129_v57 = vmul.f32 -1.442695, %v1905_v39 }
 0x8e1   :  { %2866 = vpow2.f32 %v2129_v57 }
 0x8e2   :  { %2868 = vrcp.f32 %v1933_v47 }
 0x8e3   :  { %2870 = vrcp.f32 %v1934_v62 }
 0x8e4   :  { %2872 = vrcp.f32 %v1935_v2 }
 0x8e5   :  { %2874 = vrcp.f32 %v1936_v12 }
 0x8eb   :  { %v2867_v10 = vpop.eup %2866 }
 0x8ec   :  { %v2869_v23 = vpop.eup %2868  ;;  %v1937_v14 = vadd.f32 1.0, %v2867_v10 }
 0x8ed   :  { %v2871_v0 = vpop.eup %2870  ;;  %v1979_v24 = vrot.slane %v2869_v23, %v1966_v53 }
 0x8ee   :  { %2876 = vrcp.f32 %v1937_v14  ;;  %v2873_v3 = vpop.eup %2872  ;;  %v1983_v33 = vrot.slane %v2871_v0, %v1966_v53 }
 0x8ef   :  { %v2001_v11 = vsel %vm2000_vm4, %v1979_v24, %v1999_v7  ;;  %v2875_v19 = vpop.eup %2874  ;;  %v1987_v37 = vrot.slane %v2873_v3, %v1966_v53 }
 0x8f0   :  { %v2003_v34 = vsel %vm2002_vm5, %v1983_v33, %v2001_v11  ;;  %v1991_v40 = vrot.slane %v2875_v19, %v1966_v53 }
 0x8f1   :  { %v2005_v32 = vsel %vm2004_vm6, %v1987_v37, %v2003_v34 }
 0x8f2   :  { %v2007_v48 = vsel %vm2006_vm7, %v1991_v40, %v2005_v32 }
 0x8f8   :  { %v2877_v35 = vpop.eup %2876 }
 0x8f9   :  { %v1995_v29 = vrot.slane %v2877_v35, %v1966_v53 }
 0x8fb   :  { %v2009_v49 = vsel %vm2008_vm8, %v1995_v29, %v2007_v48 }
 0x8fc   :  { %2011 = vxpose.xlu1.b32.start.end [1/1] (short) (narrow) %v2009_v49, 8 }
 0x8fd   :  { %2911 = shalt.err (!%p2908_p12)
}
 0x8fe   :  { %s2912_s16 = scalar_lea.hbm %s3537_s6, 1024 }
 0x8ff   :  { %p2913_p13 = scmp.ne.s32.totalorder %s3537_s6, %s2912_s16  ;;  %p2916_p0 = scmp.lt.u32.totalorder %s2912_s16, %s3537_s6 }
 0x901   :  { %p2918_p1 = pnand %p2916_p0, %p2913_p13 }
 0x903   :  { %2921 = shalt.err (!%p2918_p1)
}
 0x904   :  { %s2956_s21 = smov 128   ;;  %s2957_s1 = smov 8   ;;  %vm2043_vm9 = vcmask 64512  }
 0x905   :  { %2056 = dma.vmem_to_hbm [thread:$0]  %s2051_s12, 1024, %s3537_s6, [#allocation6], %s2956_s21, %s2956_s21, %s2957_s1  }
 0x906   :  { %s2958_s23 = smov [#allocation8]  }
 0x907   :  { %s2063_s24 = sshll.u32 %s2958_s23, 4  ;;  %s2064_s24 = int_to_ptr.vmem [resolvable:$true] %s2063_s24 }
 0x908   :  { %s2922_s25 = scalar_lea.vmem %s2064_s24, 128  ;;  %p2927_p3 = scmp.lt.s32.totalorder %s2064_s24, %s2064_s24 }
 0x909   :  { %p2923_p2 = scmp.ne.s32.totalorder %s2064_s24, %s2922_s25  ;;  %p2928_p4 = scmp.lt.s32.totalorder %s2922_s25, %s2922_s25 }
 0x90b   :  { %p2929_p5 = por %p2928_p4, %p2927_p3 }
 0x90d   :  { %p2930_p6 = pnand %p2929_p5, %p2923_p2 }
 0x97c   :  { %v2027_v50 = vpop.trf.xlu1 }
 0x97d   :  { %2044 = vst.msk [vmem:[#allocation8] sm:$0xff] %vm2043_vm9, %v2027_v50 }
 0x97e   :  { %2933 = shalt.err (!%p2930_p6)
}
 0x97f   :  { %s2934_s28 = scalar_lea.hbm %s3538_s7, 128 }
 0x980   :  { %p2935_p7 = scmp.ne.s32.totalorder %s3538_s7, %s2934_s28  ;;  %p2938_p8 = scmp.lt.u32.totalorder %s2934_s28, %s3538_s7 }
 0x982   :  { %p2940_p9 = pnand %p2938_p8, %p2935_p7 }
 0x984   :  { %2943 = shalt.err (!%p2940_p9)
}
 0x985   :  { %2066 = dma.vmem_to_hbm [thread:$0]  %s2064_s24, 128, %s3538_s7, [#allocation9]  }
 0x986   :  { %2946 = dma.done.wait [#allocation6], 1024  }
 0x987   :  { %2947 = vsyncadd [#allocation6], 4294966272 }
 0x988   :  { %2948 = dma.done.wait [#allocation9], 128  }
 0x989   :  { %2949 = vsyncadd [#allocation9], 4294967168 }
 0x98a   :  { %2073 = vsyncpa [#allocation5], 1 }
 0x98b   :  { %2074 = vsyncpa [#allocation6], 1 }
 0x98c   :  { %2075 = vsyncpa [#allocation9], 1 }

</bundles_post_ra>
